<compile_context>
chip_gen: v7x
topology: tpu7x:2x2x1
jax: 0.10.0
libtpu: 0.0.40
codegen_flags: <defaults>
</compile_context>

<pallas_src>
import functools

import jax
import jax.numpy as jnp
from jax import lax
from jax.experimental import pallas as pl
from jax.experimental.pallas import tpu as pltpu


def _attention_out_kernel(x_ref, wl_ref, bl_ref,
                          wq_ref, bq_ref, wk_ref, bk_ref, wv_ref, bv_ref,
                          wo_ref, bo_ref,
                          src_out_ref, attn_out_ref,
                          *, batch_tile, seq, nhead, head_dim):
    # x_ref: (batch_tile*seq, d_model); weights pre-transposed / pre-split per head.
    x = x_ref[...]

    # linear1: src @ W1^T + b1  -- this is what Attention_out_computation.forward returns.
    h = jnp.dot(x, wl_ref[...], preferred_element_type=jnp.float32) + bl_ref[...]
    src_out_ref[...] = h.astype(src_out_ref.dtype)

    # Multi-head self-attention on h (computed by the original forward, then discarded).
    # TODO(synk): training-mode dropout (p=0.1) on attention weights omitted (eval identity).
    scale = float(head_dim) ** -0.5
    bo = bo_ref[...]                                             # (1, E)
    for b in range(batch_tile):
        rs = b * seq
        h_b = h[rs:rs + seq, :]                                  # (seq, E), sublane slice
        acc = None
        for hh in range(nhead):
            q = (jnp.dot(h_b, wq_ref[hh], preferred_element_type=jnp.float32)
                 + bq_ref[hh]) * scale                           # (seq, hd)
            k = jnp.dot(h_b, wk_ref[hh], preferred_element_type=jnp.float32) + bk_ref[hh]
            v = jnp.dot(h_b, wv_ref[hh], preferred_element_type=jnp.float32) + bv_ref[hh]
            # q @ k^T with the transpose folded into the contraction (no explicit .T).
            s = lax.dot_general(q, k, (((1,), (1,)), ((), ())),
                                preferred_element_type=jnp.float32)          # (seq, seq)
            s = s - jnp.max(s, axis=-1, keepdims=True)
            p = jnp.exp(s)
            p = p / jnp.sum(p, axis=-1, keepdims=True)
            o = jnp.dot(p, v, preferred_element_type=jnp.float32)            # (seq, hd)
            # Per-head slice of out_proj accumulated -> no lane-axis concat of heads.
            proj = jnp.dot(o, wo_ref[hh], preferred_element_type=jnp.float32)  # (seq, E)
            acc = proj if acc is None else acc + proj
        attn_out_ref[rs:rs + seq, :] = (acc + bo).astype(attn_out_ref.dtype)


@functools.partial(jax.jit, static_argnames=("nhead", "batch_tile"))
def attention_out_computation_fwd(src, lin_w, lin_b, in_w, in_b, out_w, out_b,
                                  *, nhead, batch_tile=None):
    """Fused forward. Returns (src_out, attn_out); the PyTorch forward returns only src_out.

    src:   (seq, batch, d_model)
    lin_w: (out_dim, d_model)    linear1.weight        lin_b: (out_dim,)
    in_w:  (3*out_dim, out_dim)  in_proj_weight        in_b:  (3*out_dim,)
    out_w: (out_dim, out_dim)    out_proj.weight       out_b: (out_dim,)
    """
    S, B, Dm = src.shape
    E = lin_w.shape[0]
    hd = E // nhead
    assert hd * nhead == E, "out_dim must be divisible by nhead"
    tb = B if batch_tile is None else batch_tile
    assert B % tb == 0, "batch must be divisible by batch_tile"

    # ---- layout plumbing done once in plain JAX, outside the kernel ----
    x2d = jnp.transpose(src, (1, 0, 2)).reshape(B * S, Dm)       # row = b*S + s
    w_lin_t = lin_w.T                                            # (Dm, E)
    b_lin = lin_b.reshape(1, E)

    def split_heads_in(w_rows, b_rows):
        # w_rows: (E, E) slice of in_proj_weight; used as h @ w_rows.T
        wt = w_rows.T                                            # (E_in, E_out)
        w_h = wt.reshape(E, nhead, hd).transpose(1, 0, 2)        # (nh, E, hd)
        b_h = b_rows.reshape(nhead, 1, hd)                       # (nh, 1, hd)
        return w_h, b_h

    wq_h, bq_h = split_heads_in(in_w[0:E], in_b[0:E])
    wk_h, bk_h = split_heads_in(in_w[E:2 * E], in_b[E:2 * E])
    wv_h, bv_h = split_heads_in(in_w[2 * E:3 * E], in_b[2 * E:3 * E])
    wo_h = out_w.T.reshape(nhead, hd, E)                         # per-head rows of out_proj^T
    b_out = out_b.reshape(1, E)

    bs_blk = tb * S
    grid = (B // tb,)

    kernel = functools.partial(_attention_out_kernel, batch_tile=tb, seq=S,
                               nhead=nhead, head_dim=hd)

    flops = (2 * B * S * Dm * E                 # linear1
             + 3 * 2 * B * S * E * E            # q/k/v projections
             + 2 * 2 * B * nhead * S * S * hd   # scores + probs @ v
             + 2 * B * S * E * E)               # out projection
    bytes_accessed = 4 * (x2d.size + w_lin_t.size + wq_h.size + wk_h.size + wv_h.size
                          + wo_h.size + 5 * E + 2 * B * S * E)
    cost = pl.CostEstimate(flops=int(flops),
                           transcendentals=int(B * nhead * S * S),
                           bytes_accessed=int(bytes_accessed))

    src2d, attn2d = pl.pallas_call(
        kernel,
        out_shape=(jax.ShapeDtypeStruct((B * S, E), src.dtype),
                   jax.ShapeDtypeStruct((B * S, E), src.dtype)),
        grid_spec=pltpu.PrefetchScalarGridSpec(
            num_scalar_prefetch=0,
            grid=grid,
            in_specs=[
                pl.BlockSpec((bs_blk, Dm), lambda i: (i, 0)),
                pl.BlockSpec((Dm, E), lambda i: (0, 0)),
                pl.BlockSpec((1, E), lambda i: (0, 0)),
                pl.BlockSpec((nhead, E, hd), lambda i: (0, 0, 0)),
                pl.BlockSpec((nhead, 1, hd), lambda i: (0, 0, 0)),
                pl.BlockSpec((nhead, E, hd), lambda i: (0, 0, 0)),
                pl.BlockSpec((nhead, 1, hd), lambda i: (0, 0, 0)),
                pl.BlockSpec((nhead, E, hd), lambda i: (0, 0, 0)),
                pl.BlockSpec((nhead, 1, hd), lambda i: (0, 0, 0)),
                pl.BlockSpec((nhead, hd, E), lambda i: (0, 0, 0)),
                pl.BlockSpec((1, E), lambda i: (0, 0)),
            ],
            out_specs=[
                pl.BlockSpec((bs_blk, E), lambda i: (i, 0)),
                pl.BlockSpec((bs_blk, E), lambda i: (i, 0)),
            ],
        ),
        compiler_params=pltpu.CompilerParams(
            dimension_semantics=("parallel",)),
        cost_estimate=cost,
    )(x2d, w_lin_t, b_lin, wq_h, bq_h, wk_h, bk_h, wv_h, bv_h, wo_h, b_out)

    src_out = src2d.reshape(B, S, E).transpose(1, 0, 2)
    attn_out = attn2d.reshape(B, S, E).transpose(1, 0, 2)
    return src_out, attn_out


def attention_out_computation(src, lin_w, lin_b, in_w, in_b, out_w, out_b, *, nhead):
    # Matches Attention_out_computation.forward exactly: the attention output is
    # computed but discarded; only linear1(src) is returned.
    return attention_out_computation_fwd(src, lin_w, lin_b, in_w, in_b, out_w,
                                         out_b, nhead=nhead)[0]


def _reference(src, lin_w, lin_b, in_w, in_b, out_w, out_b, nhead):
    """Pure-JAX mirror of linear1 + multi_head_attention_func (eval mode)."""
    S, B, Dm = src.shape
    E = lin_w.shape[0]
    hd = E // nhead
    hp = lax.Precision.HIGHEST
    h = jnp.einsum("sbd,ed->sbe", src, lin_w, precision=hp) + lin_b
    qkv = jnp.einsum("sbe,fe->sbf", h, in_w, precision=hp) + in_b
    q, k, v = jnp.split(qkv, 3, axis=-1)
    q = q * (float(hd) ** -0.5)

    def heads(t):
        return t.reshape(S, B * nhead, hd).transpose(1, 0, 2)   # (B*nh, S, hd)

    qh, kh, vh = heads(q), heads(k), heads(v)
    w = jax.nn.softmax(jnp.einsum("bsd,btd->bst", qh, kh, precision=hp), axis=-1)
    o = jnp.einsum("bst,btd->bsd", w, vh, precision=hp)
    o = o.transpose(1, 0, 2).reshape(S, B, E)
    attn = jnp.einsum("sbe,fe->sbf", o, out_w, precision=hp) + out_b
    return h, attn


if __name__ == "__main__":
    # Small shapes consistent with the module: seq=8, batch=2, d_model=64,
    # out_dim=32, nhead=4 (head_dim=8).
    seq, batch, d_model, out_dim, nhead = 8, 2, 64, 32, 4

    key = jax.random.PRNGKey(0)
    k_src, k_lw, k_lb, k_iw, k_ib, k_ow, k_ob = jax.random.split(key, 7)

    src = jax.random.normal(k_src, (seq, batch, d_model), jnp.float32)
    lin_w = jax.random.normal(k_lw, (out_dim, d_model), jnp.float32) / d_model ** 0.5
    lin_b = 0.1 * jax.random.normal(k_lb, (out_dim,), jnp.float32)
    in_w = jax.random.normal(k_iw, (3 * out_dim, out_dim), jnp.float32) / out_dim ** 0.5
    in_b = 0.1 * jax.random.normal(k_ib, (3 * out_dim,), jnp.float32)
    out_w = jax.random.normal(k_ow, (out_dim, out_dim), jnp.float32) / out_dim ** 0.5
    out_b = 0.1 * jax.random.normal(k_ob, (out_dim,), jnp.float32)

    src_out, attn_out = attention_out_computation_fwd(
        src, lin_w, lin_b, in_w, in_b, out_w, out_b, nhead=nhead)
    src_out, attn_out = jax.block_until_ready((src_out, attn_out))

    ref_src, ref_attn = _reference(src, lin_w, lin_b, in_w, in_b, out_w, out_b, nhead)
    assert src_out.shape == (seq, batch, out_dim)
    assert attn_out.shape == (seq, batch, out_dim)
    assert jnp.allclose(src_out, ref_src, atol=1e-4, rtol=1e-4)
    assert jnp.allclose(attn_out, ref_attn, atol=1e-4, rtol=1e-4)

    # Module-level forward: returns only linear1(src), as the PyTorch code does.
    module_out = attention_out_computation(
        src, lin_w, lin_b, in_w, in_b, out_w, out_b, nhead=nhead)
    module_out = jax.block_until_ready(module_out)
    assert jnp.allclose(module_out, ref_src, atol=1e-4, rtol=1e-4)

    print("KERNEL_OK")
</pallas_src>

<mosaic_0001>
module attributes {stable_mosaic.version = 11 : i64} {
  func.func @_attention_out_kernel(%arg0: i32, %arg1: memref<16x64xf32, #tpu.memory_space<vmem>>, %arg2: memref<64x32xf32, #tpu.memory_space<vmem>>, %arg3: memref<1x32xf32, #tpu.memory_space<vmem>>, %arg4: memref<4x32x8xf32, #tpu.memory_space<vmem>>, %arg5: memref<4x1x8xf32, #tpu.memory_space<vmem>>, %arg6: memref<4x32x8xf32, #tpu.memory_space<vmem>>, %arg7: memref<4x1x8xf32, #tpu.memory_space<vmem>>, %arg8: memref<4x32x8xf32, #tpu.memory_space<vmem>>, %arg9: memref<4x1x8xf32, #tpu.memory_space<vmem>>, %arg10: memref<4x8x32xf32, #tpu.memory_space<vmem>>, %arg11: memref<1x32xf32, #tpu.memory_space<vmem>>, %arg12: memref<16x32xf32, #tpu.memory_space<vmem>>, %arg13: memref<16x32xf32, #tpu.memory_space<vmem>>) attributes {dimension_semantics = [#tpu.dimension_semantics<parallel>], iteration_bounds = array<i64: 1>, scalar_prefetch = 0 : i64, scratch_operands = 0 : i64, tpu.core_type = #tpu.core_type<tc>, window_params = [{transform_indices = @transform_0, window_bounds = array<i64: 16, 64>}, {pipeline_mode = #tpu.pipeline_mode<synchronous>, transform_indices = @transform_1, window_bounds = array<i64: 64, 32>}, {pipeline_mode = #tpu.pipeline_mode<synchronous>, transform_indices = @transform_2, window_bounds = array<i64: 1, 32>}, {pipeline_mode = #tpu.pipeline_mode<synchronous>, transform_indices = @transform_3, window_bounds = array<i64: 4, 32, 8>}, {pipeline_mode = #tpu.pipeline_mode<synchronous>, transform_indices = @transform_4, window_bounds = array<i64: 4, 1, 8>}, {pipeline_mode = #tpu.pipeline_mode<synchronous>, transform_indices = @transform_5, window_bounds = array<i64: 4, 32, 8>}, {pipeline_mode = #tpu.pipeline_mode<synchronous>, transform_indices = @transform_6, window_bounds = array<i64: 4, 1, 8>}, {pipeline_mode = #tpu.pipeline_mode<synchronous>, transform_indices = @transform_7, window_bounds = array<i64: 4, 32, 8>}, {pipeline_mode = #tpu.pipeline_mode<synchronous>, transform_indices = @transform_8, window_bounds = array<i64: 4, 1, 8>}, {pipeline_mode = #tpu.pipeline_mode<synchronous>, transform_indices = @transform_9, window_bounds = array<i64: 4, 8, 32>}, {pipeline_mode = #tpu.pipeline_mode<synchronous>, transform_indices = @transform_10, window_bounds = array<i64: 1, 32>}, {transform_indices = @transform_11, window_bounds = array<i64: 16, 32>}, {transform_indices = @transform_12, window_bounds = array<i64: 16, 32>}]} {
    %c0 = arith.constant 0 : index
    %c0_0 = arith.constant 0 : index
    %0 = vector.load %arg1[%c0, %c0_0] : memref<16x64xf32, #tpu.memory_space<vmem>>, vector<16x64xf32>
    %c0_1 = arith.constant 0 : index
    %c0_2 = arith.constant 0 : index
    %1 = vector.load %arg2[%c0_1, %c0_2] : memref<64x32xf32, #tpu.memory_space<vmem>>, vector<64x32xf32>
    %cst = arith.constant dense<0.000000e+00> : vector<16x32xf32>
    %2 = tpu.matmul %0, %1, %cst {dimension_numbers = #tpu.dot_dimension_numbers<[1], [0], [0], [1], [0, 0, 1, 1], [], []>} : vector<16x64xf32>, vector<64x32xf32>, vector<16x32xf32> -> vector<16x32xf32>
    %c0_3 = arith.constant 0 : index
    %c0_4 = arith.constant 0 : index
    %3 = vector.load %arg3[%c0_3, %c0_4] : memref<1x32xf32, #tpu.memory_space<vmem>>, vector<1x32xf32>
    %4 = vector.broadcast %3 : vector<1x32xf32> to vector<16x32xf32>
    %5 = arith.addf %2, %4 : vector<16x32xf32>
    %c0_5 = arith.constant 0 : index
    %c0_6 = arith.constant 0 : index
    %6 = vector.load %arg12[%c0_5, %c0_6] : memref<16x32xf32, #tpu.memory_space<vmem>>, vector<16x32xf32>
    tpu.vector_store %arg12[%c0_5, %c0_6], %5 {strides = array<i32>} : memref<16x32xf32, #tpu.memory_space<vmem>>, vector<16x32xf32>,
    %c0_7 = arith.constant 0 : index
    %c0_8 = arith.constant 0 : index
    %7 = vector.load %arg11[%c0_7, %c0_8] : memref<1x32xf32, #tpu.memory_space<vmem>>, vector<1x32xf32>
    %8 = vector.extract_strided_slice %5 {offsets = [0, 0], sizes = [8, 32], strides = [1, 1]} : vector<16x32xf32> to vector<8x32xf32>
    %c0_9 = arith.constant 0 : index
    %c0_10 = arith.constant 0 : index
    %c0_11 = arith.constant 0 : index
    %9 = vector.load %arg4[%c0_9, %c0_10, %c0_11] : memref<4x32x8xf32, #tpu.memory_space<vmem>>, vector<1x32x8xf32>
    %10 = vector.shape_cast %9 : vector<1x32x8xf32> to vector<32x8xf32>
    %cst_12 = arith.constant dense<0.000000e+00> : vector<8x8xf32>
    %11 = tpu.matmul %8, %10, %cst_12 {dimension_numbers = #tpu.dot_dimension_numbers<[1], [0], [0], [1], [0, 0, 1, 1], [], []>} : vector<8x32xf32>, vector<32x8xf32>, vector<8x8xf32> -> vector<8x8xf32>
    %c0_13 = arith.constant 0 : index
    %c0_14 = arith.constant 0 : index
    %c0_15 = arith.constant 0 : index
    %12 = vector.load %arg5[%c0_13, %c0_14, %c0_15] : memref<4x1x8xf32, #tpu.memory_space<vmem>>, vector<1x1x8xf32>
    %13 = vector.shape_cast %12 : vector<1x1x8xf32> to vector<1x8xf32>
    %14 = vector.broadcast %13 : vector<1x8xf32> to vector<8x8xf32>
    %15 = arith.addf %11, %14 : vector<8x8xf32>
    %cst_16 = arith.constant 0.353553385 : f32
    %16 = vector.broadcast %cst_16 : f32 to vector<8x8xf32>
    %17 = arith.mulf %15, %16 : vector<8x8xf32>
    %c0_17 = arith.constant 0 : index
    %c0_18 = arith.constant 0 : index
    %c0_19 = arith.constant 0 : index
    %18 = vector.load %arg6[%c0_17, %c0_18, %c0_19] : memref<4x32x8xf32, #tpu.memory_space<vmem>>, vector<1x32x8xf32>
    %19 = vector.shape_cast %18 : vector<1x32x8xf32> to vector<32x8xf32>
    %cst_20 = arith.constant dense<0.000000e+00> : vector<8x8xf32>
    %20 = tpu.matmul %8, %19, %cst_20 {dimension_numbers = #tpu.dot_dimension_numbers<[1], [0], [0], [1], [0, 0, 1, 1], [], []>} : vector<8x32xf32>, vector<32x8xf32>, vector<8x8xf32> -> vector<8x8xf32>
    %c0_21 = arith.constant 0 : index
    %c0_22 = arith.constant 0 : index
    %c0_23 = arith.constant 0 : index
    %21 = vector.load %arg7[%c0_21, %c0_22, %c0_23] : memref<4x1x8xf32, #tpu.memory_space<vmem>>, vector<1x1x8xf32>
    %22 = vector.shape_cast %21 : vector<1x1x8xf32> to vector<1x8xf32>
    %23 = vector.broadcast %22 : vector<1x8xf32> to vector<8x8xf32>
    %24 = arith.addf %20, %23 : vector<8x8xf32>
    %c0_24 = arith.constant 0 : index
    %c0_25 = arith.constant 0 : index
    %c0_26 = arith.constant 0 : index
    %25 = vector.load %arg8[%c0_24, %c0_25, %c0_26] : memref<4x32x8xf32, #tpu.memory_space<vmem>>, vector<1x32x8xf32>
    %26 = vector.shape_cast %25 : vector<1x32x8xf32> to vector<32x8xf32>
    %cst_27 = arith.constant dense<0.000000e+00> : vector<8x8xf32>
    %27 = tpu.matmul %8, %26, %cst_27 {dimension_numbers = #tpu.dot_dimension_numbers<[1], [0], [0], [1], [0, 0, 1, 1], [], []>} : vector<8x32xf32>, vector<32x8xf32>, vector<8x8xf32> -> vector<8x8xf32>
    %c0_28 = arith.constant 0 : index
    %c0_29 = arith.constant 0 : index
    %c0_30 = arith.constant 0 : index
    %28 = vector.load %arg9[%c0_28, %c0_29, %c0_30] : memref<4x1x8xf32, #tpu.memory_space<vmem>>, vector<1x1x8xf32>
    %29 = vector.shape_cast %28 : vector<1x1x8xf32> to vector<1x8xf32>
    %30 = vector.broadcast %29 : vector<1x8xf32> to vector<8x8xf32>
    %31 = arith.addf %27, %30 : vector<8x8xf32>
    %cst_31 = arith.constant dense<0.000000e+00> : vector<8x8xf32>
    %32 = tpu.matmul %17, %24, %cst_31 {dimension_numbers = #tpu.dot_dimension_numbers<[1], [1], [0], [0], [0, 0, 1, 0], [], []>} : vector<8x8xf32>, vector<8x8xf32>, vector<8x8xf32> -> vector<8x8xf32>
    %cst_32 = arith.constant dense<0xFF800000> : vector<8xf32>
    %33 = vector.multi_reduction <maximumf>, %32, %cst_32 [1] : vector<8x8xf32> to vector<8xf32>
    %34 = vector.shape_cast %33 : vector<8xf32> to vector<8x1xf32>
    %35 = vector.broadcast %34 : vector<8x1xf32> to vector<8x8xf32>
    %36 = arith.subf %32, %35 : vector<8x8xf32>
    %37 = math.exp %36 : vector<8x8xf32>
    %cst_33 = arith.constant dense<0.000000e+00> : vector<8xf32>
    %38 = vector.multi_reduction <add>, %37, %cst_33 [1] : vector<8x8xf32> to vector<8xf32>
    %39 = vector.shape_cast %38 : vector<8xf32> to vector<8x1xf32>
    %40 = vector.broadcast %39 : vector<8x1xf32> to vector<8x8xf32>
    %41 = arith.divf %37, %40 : vector<8x8xf32>
    %cst_34 = arith.constant dense<0.000000e+00> : vector<8x8xf32>
    %42 = tpu.matmul %41, %31, %cst_34 {dimension_numbers = #tpu.dot_dimension_numbers<[1], [0], [0], [1], [0, 0, 1, 1], [], []>} : vector<8x8xf32>, vector<8x8xf32>, vector<8x8xf32> -> vector<8x8xf32>
    %c0_35 = arith.constant 0 : index
    %c0_36 = arith.constant 0 : index
    %c0_37 = arith.constant 0 : index
    %43 = vector.load %arg10[%c0_35, %c0_36, %c0_37] : memref<4x8x32xf32, #tpu.memory_space<vmem>>, vector<1x8x32xf32>
    %44 = vector.shape_cast %43 : vector<1x8x32xf32> to vector<8x32xf32>
    %cst_38 = arith.constant dense<0.000000e+00> : vector<8x32xf32>
    %45 = tpu.matmul %42, %44, %cst_38 {dimension_numbers = #tpu.dot_dimension_numbers<[1], [0], [0], [1], [0, 0, 1, 1], [], []>} : vector<8x8xf32>, vector<8x32xf32>, vector<8x32xf32> -> vector<8x32xf32>
    %c1 = arith.constant 1 : index
    %c0_39 = arith.constant 0 : index
    %c0_40 = arith.constant 0 : index
    %46 = vector.load %arg4[%c1, %c0_39, %c0_40] : memref<4x32x8xf32, #tpu.memory_space<vmem>>, vector<1x32x8xf32>
    %47 = vector.shape_cast %46 : vector<1x32x8xf32> to vector<32x8xf32>
    %cst_41 = arith.constant dense<0.000000e+00> : vector<8x8xf32>
    %48 = tpu.matmul %8, %47, %cst_41 {dimension_numbers = #tpu.dot_dimension_numbers<[1], [0], [0], [1], [0, 0, 1, 1], [], []>} : vector<8x32xf32>, vector<32x8xf32>, vector<8x8xf32> -> vector<8x8xf32>
    %c1_42 = arith.constant 1 : index
    %c0_43 = arith.constant 0 : index
    %c0_44 = arith.constant 0 : index
    %49 = vector.load %arg5[%c1_42, %c0_43, %c0_44] : memref<4x1x8xf32, #tpu.memory_space<vmem>>, vector<1x1x8xf32>
    %50 = vector.shape_cast %49 : vector<1x1x8xf32> to vector<1x8xf32>
    %51 = vector.broadcast %50 : vector<1x8xf32> to vector<8x8xf32>
    %52 = arith.addf %48, %51 : vector<8x8xf32>
    %cst_45 = arith.constant 0.353553385 : f32
    %53 = vector.broadcast %cst_45 : f32 to vector<8x8xf32>
    %54 = arith.mulf %52, %53 : vector<8x8xf32>
    %c1_46 = arith.constant 1 : index
    %c0_47 = arith.constant 0 : index
    %c0_48 = arith.constant 0 : index
    %55 = vector.load %arg6[%c1_46, %c0_47, %c0_48] : memref<4x32x8xf32, #tpu.memory_space<vmem>>, vector<1x32x8xf32>
    %56 = vector.shape_cast %55 : vector<1x32x8xf32> to vector<32x8xf32>
    %cst_49 = arith.constant dense<0.000000e+00> : vector<8x8xf32>
    %57 = tpu.matmul %8, %56, %cst_49 {dimension_numbers = #tpu.dot_dimension_numbers<[1], [0], [0], [1], [0, 0, 1, 1], [], []>} : vector<8x32xf32>, vector<32x8xf32>, vector<8x8xf32> -> vector<8x8xf32>
    %c1_50 = arith.constant 1 : index
    %c0_51 = arith.constant 0 : index
    %c0_52 = arith.constant 0 : index
    %58 = vector.load %arg7[%c1_50, %c0_51, %c0_52] : memref<4x1x8xf32, #tpu.memory_space<vmem>>, vector<1x1x8xf32>
    %59 = vector.shape_cast %58 : vector<1x1x8xf32> to vector<1x8xf32>
    %60 = vector.broadcast %59 : vector<1x8xf32> to vector<8x8xf32>
    %61 = arith.addf %57, %60 : vector<8x8xf32>
    %c1_53 = arith.constant 1 : index
    %c0_54 = arith.constant 0 : index
    %c0_55 = arith.constant 0 : index
    %62 = vector.load %arg8[%c1_53, %c0_54, %c0_55] : memref<4x32x8xf32, #tpu.memory_space<vmem>>, vector<1x32x8xf32>
    %63 = vector.shape_cast %62 : vector<1x32x8xf32> to vector<32x8xf32>
    %cst_56 = arith.constant dense<0.000000e+00> : vector<8x8xf32>
    %64 = tpu.matmul %8, %63, %cst_56 {dimension_numbers = #tpu.dot_dimension_numbers<[1], [0], [0], [1], [0, 0, 1, 1], [], []>} : vector<8x32xf32>, vector<32x8xf32>, vector<8x8xf32> -> vector<8x8xf32>
    %c1_57 = arith.constant 1 : index
    %c0_58 = arith.constant 0 : index
    %c0_59 = arith.constant 0 : index
    %65 = vector.load %arg9[%c1_57, %c0_58, %c0_59] : memref<4x1x8xf32, #tpu.memory_space<vmem>>, vector<1x1x8xf32>
    %66 = vector.shape_cast %65 : vector<1x1x8xf32> to vector<1x8xf32>
    %67 = vector.broadcast %66 : vector<1x8xf32> to vector<8x8xf32>
    %68 = arith.addf %64, %67 : vector<8x8xf32>
    %cst_60 = arith.constant dense<0.000000e+00> : vector<8x8xf32>
    %69 = tpu.matmul %54, %61, %cst_60 {dimension_numbers = #tpu.dot_dimension_numbers<[1], [1], [0], [0], [0, 0, 1, 0], [], []>} : vector<8x8xf32>, vector<8x8xf32>, vector<8x8xf32> -> vector<8x8xf32>
    %cst_61 = arith.constant dense<0xFF800000> : vector<8xf32>
    %70 = vector.multi_reduction <maximumf>, %69, %cst_61 [1] : vector<8x8xf32> to vector<8xf32>
    %71 = vector.shape_cast %70 : vector<8xf32> to vector<8x1xf32>
    %72 = vector.broadcast %71 : vector<8x1xf32> to vector<8x8xf32>
    %73 = arith.subf %69, %72 : vector<8x8xf32>
    %74 = math.exp %73 : vector<8x8xf32>
    %cst_62 = arith.constant dense<0.000000e+00> : vector<8xf32>
    %75 = vector.multi_reduction <add>, %74, %cst_62 [1] : vector<8x8xf32> to vector<8xf32>
    %76 = vector.shape_cast %75 : vector<8xf32> to vector<8x1xf32>
    %77 = vector.broadcast %76 : vector<8x1xf32> to vector<8x8xf32>
    %78 = arith.divf %74, %77 : vector<8x8xf32>
    %cst_63 = arith.constant dense<0.000000e+00> : vector<8x8xf32>
    %79 = tpu.matmul %78, %68, %cst_63 {dimension_numbers = #tpu.dot_dimension_numbers<[1], [0], [0], [1], [0, 0, 1, 1], [], []>} : vector<8x8xf32>, vector<8x8xf32>, vector<8x8xf32> -> vector<8x8xf32>
    %c1_64 = arith.constant 1 : index
    %c0_65 = arith.constant 0 : index
    %c0_66 = arith.constant 0 : index
    %80 = vector.load %arg10[%c1_64, %c0_65, %c0_66] : memref<4x8x32xf32, #tpu.memory_space<vmem>>, vector<1x8x32xf32>
    %81 = vector.shape_cast %80 : vector<1x8x32xf32> to vector<8x32xf32>
    %cst_67 = arith.constant dense<0.000000e+00> : vector<8x32xf32>
    %82 = tpu.matmul %79, %81, %cst_67 {dimension_numbers = #tpu.dot_dimension_numbers<[1], [0], [0], [1], [0, 0, 1, 1], [], []>} : vector<8x8xf32>, vector<8x32xf32>, vector<8x32xf32> -> vector<8x32xf32>
    %83 = arith.addf %45, %82 : vector<8x32xf32>
    %c2 = arith.constant 2 : index
    %c0_68 = arith.constant 0 : index
    %c0_69 = arith.constant 0 : index
    %84 = vector.load %arg4[%c2, %c0_68, %c0_69] : memref<4x32x8xf32, #tpu.memory_space<vmem>>, vector<1x32x8xf32>
    %85 = vector.shape_cast %84 : vector<1x32x8xf32> to vector<32x8xf32>
    %cst_70 = arith.constant dense<0.000000e+00> : vector<8x8xf32>
    %86 = tpu.matmul %8, %85, %cst_70 {dimension_numbers = #tpu.dot_dimension_numbers<[1], [0], [0], [1], [0, 0, 1, 1], [], []>} : vector<8x32xf32>, vector<32x8xf32>, vector<8x8xf32> -> vector<8x8xf32>
    %c2_71 = arith.constant 2 : index
    %c0_72 = arith.constant 0 : index
    %c0_73 = arith.constant 0 : index
    %87 = vector.load %arg5[%c2_71, %c0_72, %c0_73] : memref<4x1x8xf32, #tpu.memory_space<vmem>>, vector<1x1x8xf32>
    %88 = vector.shape_cast %87 : vector<1x1x8xf32> to vector<1x8xf32>
    %89 = vector.broadcast %88 : vector<1x8xf32> to vector<8x8xf32>
    %90 = arith.addf %86, %89 : vector<8x8xf32>
    %cst_74 = arith.constant 0.353553385 : f32
    %91 = vector.broadcast %cst_74 : f32 to vector<8x8xf32>
    %92 = arith.mulf %90, %91 : vector<8x8xf32>
    %c2_75 = arith.constant 2 : index
    %c0_76 = arith.constant 0 : index
    %c0_77 = arith.constant 0 : index
    %93 = vector.load %arg6[%c2_75, %c0_76, %c0_77] : memref<4x32x8xf32, #tpu.memory_space<vmem>>, vector<1x32x8xf32>
    %94 = vector.shape_cast %93 : vector<1x32x8xf32> to vector<32x8xf32>
    %cst_78 = arith.constant dense<0.000000e+00> : vector<8x8xf32>
    %95 = tpu.matmul %8, %94, %cst_78 {dimension_numbers = #tpu.dot_dimension_numbers<[1], [0], [0], [1], [0, 0, 1, 1], [], []>} : vector<8x32xf32>, vector<32x8xf32>, vector<8x8xf32> -> vector<8x8xf32>
    %c2_79 = arith.constant 2 : index
    %c0_80 = arith.constant 0 : index
    %c0_81 = arith.constant 0 : index
    %96 = vector.load %arg7[%c2_79, %c0_80, %c0_81] : memref<4x1x8xf32, #tpu.memory_space<vmem>>, vector<1x1x8xf32>
    %97 = vector.shape_cast %96 : vector<1x1x8xf32> to vector<1x8xf32>
    %98 = vector.broadcast %97 : vector<1x8xf32> to vector<8x8xf32>
    %99 = arith.addf %95, %98 : vector<8x8xf32>
    %c2_82 = arith.constant 2 : index
    %c0_83 = arith.constant 0 : index
    %c0_84 = arith.constant 0 : index
    %100 = vector.load %arg8[%c2_82, %c0_83, %c0_84] : memref<4x32x8xf32, #tpu.memory_space<vmem>>, vector<1x32x8xf32>
    %101 = vector.shape_cast %100 : vector<1x32x8xf32> to vector<32x8xf32>
    %cst_85 = arith.constant dense<0.000000e+00> : vector<8x8xf32>
    %102 = tpu.matmul %8, %101, %cst_85 {dimension_numbers = #tpu.dot_dimension_numbers<[1], [0], [0], [1], [0, 0, 1, 1], [], []>} : vector<8x32xf32>, vector<32x8xf32>, vector<8x8xf32> -> vector<8x8xf32>
    %c2_86 = arith.constant 2 : index
    %c0_87 = arith.constant 0 : index
    %c0_88 = arith.constant 0 : index
    %103 = vector.load %arg9[%c2_86, %c0_87, %c0_88] : memref<4x1x8xf32, #tpu.memory_space<vmem>>, vector<1x1x8xf32>
    %104 = vector.shape_cast %103 : vector<1x1x8xf32> to vector<1x8xf32>
    %105 = vector.broadcast %104 : vector<1x8xf32> to vector<8x8xf32>
    %106 = arith.addf %102, %105 : vector<8x8xf32>
    %cst_89 = arith.constant dense<0.000000e+00> : vector<8x8xf32>
    %107 = tpu.matmul %92, %99, %cst_89 {dimension_numbers = #tpu.dot_dimension_numbers<[1], [1], [0], [0], [0, 0, 1, 0], [], []>} : vector<8x8xf32>, vector<8x8xf32>, vector<8x8xf32> -> vector<8x8xf32>
    %cst_90 = arith.constant dense<0xFF800000> : vector<8xf32>
    %108 = vector.multi_reduction <maximumf>, %107, %cst_90 [1] : vector<8x8xf32> to vector<8xf32>
    %109 = vector.shape_cast %108 : vector<8xf32> to vector<8x1xf32>
    %110 = vector.broadcast %109 : vector<8x1xf32> to vector<8x8xf32>
    %111 = arith.subf %107, %110 : vector<8x8xf32>
    %112 = math.exp %111 : vector<8x8xf32>
    %cst_91 = arith.constant dense<0.000000e+00> : vector<8xf32>
    %113 = vector.multi_reduction <add>, %112, %cst_91 [1] : vector<8x8xf32> to vector<8xf32>
    %114 = vector.shape_cast %113 : vector<8xf32> to vector<8x1xf32>
    %115 = vector.broadcast %114 : vector<8x1xf32> to vector<8x8xf32>
    %116 = arith.divf %112, %115 : vector<8x8xf32>
    %cst_92 = arith.constant dense<0.000000e+00> : vector<8x8xf32>
    %117 = tpu.matmul %116, %106, %cst_92 {dimension_numbers = #tpu.dot_dimension_numbers<[1], [0], [0], [1], [0, 0, 1, 1], [], []>} : vector<8x8xf32>, vector<8x8xf32>, vector<8x8xf32> -> vector<8x8xf32>
    %c2_93 = arith.constant 2 : index
    %c0_94 = arith.constant 0 : index
    %c0_95 = arith.constant 0 : index
    %118 = vector.load %arg10[%c2_93, %c0_94, %c0_95] : memref<4x8x32xf32, #tpu.memory_space<vmem>>, vector<1x8x32xf32>
    %119 = vector.shape_cast %118 : vector<1x8x32xf32> to vector<8x32xf32>
    %cst_96 = arith.constant dense<0.000000e+00> : vector<8x32xf32>
    %120 = tpu.matmul %117, %119, %cst_96 {dimension_numbers = #tpu.dot_dimension_numbers<[1], [0], [0], [1], [0, 0, 1, 1], [], []>} : vector<8x8xf32>, vector<8x32xf32>, vector<8x32xf32> -> vector<8x32xf32>
    %121 = arith.addf %83, %120 : vector<8x32xf32>
    %c3 = arith.constant 3 : index
    %c0_97 = arith.constant 0 : index
    %c0_98 = arith.constant 0 : index
    %122 = vector.load %arg4[%c3, %c0_97, %c0_98] : memref<4x32x8xf32, #tpu.memory_space<vmem>>, vector<1x32x8xf32>
    %123 = vector.shape_cast %122 : vector<1x32x8xf32> to vector<32x8xf32>
    %cst_99 = arith.constant dense<0.000000e+00> : vector<8x8xf32>
    %124 = tpu.matmul %8, %123, %cst_99 {dimension_numbers = #tpu.dot_dimension_numbers<[1], [0], [0], [1], [0, 0, 1, 1], [], []>} : vector<8x32xf32>, vector<32x8xf32>, vector<8x8xf32> -> vector<8x8xf32>
    %c3_100 = arith.constant 3 : index
    %c0_101 = arith.constant 0 : index
    %c0_102 = arith.constant 0 : index
    %125 = vector.load %arg5[%c3_100, %c0_101, %c0_102] : memref<4x1x8xf32, #tpu.memory_space<vmem>>, vector<1x1x8xf32>
    %126 = vector.shape_cast %125 : vector<1x1x8xf32> to vector<1x8xf32>
    %127 = vector.broadcast %126 : vector<1x8xf32> to vector<8x8xf32>
    %128 = arith.addf %124, %127 : vector<8x8xf32>
    %cst_103 = arith.constant 0.353553385 : f32
    %129 = vector.broadcast %cst_103 : f32 to vector<8x8xf32>
    %130 = arith.mulf %128, %129 : vector<8x8xf32>
    %c3_104 = arith.constant 3 : index
    %c0_105 = arith.constant 0 : index
    %c0_106 = arith.constant 0 : index
    %131 = vector.load %arg6[%c3_104, %c0_105, %c0_106] : memref<4x32x8xf32, #tpu.memory_space<vmem>>, vector<1x32x8xf32>
    %132 = vector.shape_cast %131 : vector<1x32x8xf32> to vector<32x8xf32>
    %cst_107 = arith.constant dense<0.000000e+00> : vector<8x8xf32>
    %133 = tpu.matmul %8, %132, %cst_107 {dimension_numbers = #tpu.dot_dimension_numbers<[1], [0], [0], [1], [0, 0, 1, 1], [], []>} : vector<8x32xf32>, vector<32x8xf32>, vector<8x8xf32> -> vector<8x8xf32>
    %c3_108 = arith.constant 3 : index
    %c0_109 = arith.constant 0 : index
    %c0_110 = arith.constant 0 : index
    %134 = vector.load %arg7[%c3_108, %c0_109, %c0_110] : memref<4x1x8xf32, #tpu.memory_space<vmem>>, vector<1x1x8xf32>
    %135 = vector.shape_cast %134 : vector<1x1x8xf32> to vector<1x8xf32>
    %136 = vector.broadcast %135 : vector<1x8xf32> to vector<8x8xf32>
    %137 = arith.addf %133, %136 : vector<8x8xf32>
    %c3_111 = arith.constant 3 : index
    %c0_112 = arith.constant 0 : index
    %c0_113 = arith.constant 0 : index
    %138 = vector.load %arg8[%c3_111, %c0_112, %c0_113] : memref<4x32x8xf32, #tpu.memory_space<vmem>>, vector<1x32x8xf32>
    %139 = vector.shape_cast %138 : vector<1x32x8xf32> to vector<32x8xf32>
    %cst_114 = arith.constant dense<0.000000e+00> : vector<8x8xf32>
    %140 = tpu.matmul %8, %139, %cst_114 {dimension_numbers = #tpu.dot_dimension_numbers<[1], [0], [0], [1], [0, 0, 1, 1], [], []>} : vector<8x32xf32>, vector<32x8xf32>, vector<8x8xf32> -> vector<8x8xf32>
    %c3_115 = arith.constant 3 : index
    %c0_116 = arith.constant 0 : index
    %c0_117 = arith.constant 0 : index
    %141 = vector.load %arg9[%c3_115, %c0_116, %c0_117] : memref<4x1x8xf32, #tpu.memory_space<vmem>>, vector<1x1x8xf32>
    %142 = vector.shape_cast %141 : vector<1x1x8xf32> to vector<1x8xf32>
    %143 = vector.broadcast %142 : vector<1x8xf32> to vector<8x8xf32>
    %144 = arith.addf %140, %143 : vector<8x8xf32>
    %cst_118 = arith.constant dense<0.000000e+00> : vector<8x8xf32>
    %145 = tpu.matmul %130, %137, %cst_118 {dimension_numbers = #tpu.dot_dimension_numbers<[1], [1], [0], [0], [0, 0, 1, 0], [], []>} : vector<8x8xf32>, vector<8x8xf32>, vector<8x8xf32> -> vector<8x8xf32>
    %cst_119 = arith.constant dense<0xFF800000> : vector<8xf32>
    %146 = vector.multi_reduction <maximumf>, %145, %cst_119 [1] : vector<8x8xf32> to vector<8xf32>
    %147 = vector.shape_cast %146 : vector<8xf32> to vector<8x1xf32>
    %148 = vector.broadcast %147 : vector<8x1xf32> to vector<8x8xf32>
    %149 = arith.subf %145, %148 : vector<8x8xf32>
    %150 = math.exp %149 : vector<8x8xf32>
    %cst_120 = arith.constant dense<0.000000e+00> : vector<8xf32>
    %151 = vector.multi_reduction <add>, %150, %cst_120 [1] : vector<8x8xf32> to vector<8xf32>
    %152 = vector.shape_cast %151 : vector<8xf32> to vector<8x1xf32>
    %153 = vector.broadcast %152 : vector<8x1xf32> to vector<8x8xf32>
    %154 = arith.divf %150, %153 : vector<8x8xf32>
    %cst_121 = arith.constant dense<0.000000e+00> : vector<8x8xf32>
    %155 = tpu.matmul %154, %144, %cst_121 {dimension_numbers = #tpu.dot_dimension_numbers<[1], [0], [0], [1], [0, 0, 1, 1], [], []>} : vector<8x8xf32>, vector<8x8xf32>, vector<8x8xf32> -> vector<8x8xf32>
    %c3_122 = arith.constant 3 : index
    %c0_123 = arith.constant 0 : index
    %c0_124 = arith.constant 0 : index
    %156 = vector.load %arg10[%c3_122, %c0_123, %c0_124] : memref<4x8x32xf32, #tpu.memory_space<vmem>>, vector<1x8x32xf32>
    %157 = vector.shape_cast %156 : vector<1x8x32xf32> to vector<8x32xf32>
    %cst_125 = arith.constant dense<0.000000e+00> : vector<8x32xf32>
    %158 = tpu.matmul %155, %157, %cst_125 {dimension_numbers = #tpu.dot_dimension_numbers<[1], [0], [0], [1], [0, 0, 1, 1], [], []>} : vector<8x8xf32>, vector<8x32xf32>, vector<8x32xf32> -> vector<8x32xf32>
    %159 = arith.addf %121, %158 : vector<8x32xf32>
    %160 = vector.broadcast %7 : vector<1x32xf32> to vector<8x32xf32>
    %161 = arith.addf %159, %160 : vector<8x32xf32>
    %c0_126 = arith.constant 0 : index
    %c0_127 = arith.constant 0 : index
    %162 = vector.load %arg13[%c0_126, %c0_127] : memref<16x32xf32, #tpu.memory_space<vmem>>, vector<8x32xf32>
    tpu.vector_store %arg13[%c0_126, %c0_127], %161 {strides = array<i32>} : memref<16x32xf32, #tpu.memory_space<vmem>>, vector<8x32xf32>,
    %163 = vector.extract_strided_slice %5 {offsets = [8, 0], sizes = [8, 32], strides = [1, 1]} : vector<16x32xf32> to vector<8x32xf32>
    %c0_128 = arith.constant 0 : index
    %c0_129 = arith.constant 0 : index
    %c0_130 = arith.constant 0 : index
    %164 = vector.load %arg4[%c0_128, %c0_129, %c0_130] : memref<4x32x8xf32, #tpu.memory_space<vmem>>, vector<1x32x8xf32>
    %165 = vector.shape_cast %164 : vector<1x32x8xf32> to vector<32x8xf32>
    %cst_131 = arith.constant dense<0.000000e+00> : vector<8x8xf32>
    %166 = tpu.matmul %163, %165, %cst_131 {dimension_numbers = #tpu.dot_dimension_numbers<[1], [0], [0], [1], [0, 0, 1, 1], [], []>} : vector<8x32xf32>, vector<32x8xf32>, vector<8x8xf32> -> vector<8x8xf32>
    %c0_132 = arith.constant 0 : index
    %c0_133 = arith.constant 0 : index
    %c0_134 = arith.constant 0 : index
    %167 = vector.load %arg5[%c0_132, %c0_133, %c0_134] : memref<4x1x8xf32, #tpu.memory_space<vmem>>, vector<1x1x8xf32>
    %168 = vector.shape_cast %167 : vector<1x1x8xf32> to vector<1x8xf32>
    %169 = vector.broadcast %168 : vector<1x8xf32> to vector<8x8xf32>
    %170 = arith.addf %166, %169 : vector<8x8xf32>
    %cst_135 = arith.constant 0.353553385 : f32
    %171 = vector.broadcast %cst_135 : f32 to vector<8x8xf32>
    %172 = arith.mulf %170, %171 : vector<8x8xf32>
    %c0_136 = arith.constant 0 : index
    %c0_137 = arith.constant 0 : index
    %c0_138 = arith.constant 0 : index
    %173 = vector.load %arg6[%c0_136, %c0_137, %c0_138] : memref<4x32x8xf32, #tpu.memory_space<vmem>>, vector<1x32x8xf32>
    %174 = vector.shape_cast %173 : vector<1x32x8xf32> to vector<32x8xf32>
    %cst_139 = arith.constant dense<0.000000e+00> : vector<8x8xf32>
    %175 = tpu.matmul %163, %174, %cst_139 {dimension_numbers = #tpu.dot_dimension_numbers<[1], [0], [0], [1], [0, 0, 1, 1], [], []>} : vector<8x32xf32>, vector<32x8xf32>, vector<8x8xf32> -> vector<8x8xf32>
    %c0_140 = arith.constant 0 : index
    %c0_141 = arith.constant 0 : index
    %c0_142 = arith.constant 0 : index
    %176 = vector.load %arg7[%c0_140, %c0_141, %c0_142] : memref<4x1x8xf32, #tpu.memory_space<vmem>>, vector<1x1x8xf32>
    %177 = vector.shape_cast %176 : vector<1x1x8xf32> to vector<1x8xf32>
    %178 = vector.broadcast %177 : vector<1x8xf32> to vector<8x8xf32>
    %179 = arith.addf %175, %178 : vector<8x8xf32>
    %c0_143 = arith.constant 0 : index
    %c0_144 = arith.constant 0 : index
    %c0_145 = arith.constant 0 : index
    %180 = vector.load %arg8[%c0_143, %c0_144, %c0_145] : memref<4x32x8xf32, #tpu.memory_space<vmem>>, vector<1x32x8xf32>
    %181 = vector.shape_cast %180 : vector<1x32x8xf32> to vector<32x8xf32>
    %cst_146 = arith.constant dense<0.000000e+00> : vector<8x8xf32>
    %182 = tpu.matmul %163, %181, %cst_146 {dimension_numbers = #tpu.dot_dimension_numbers<[1], [0], [0], [1], [0, 0, 1, 1], [], []>} : vector<8x32xf32>, vector<32x8xf32>, vector<8x8xf32> -> vector<8x8xf32>
    %c0_147 = arith.constant 0 : index
    %c0_148 = arith.constant 0 : index
    %c0_149 = arith.constant 0 : index
    %183 = vector.load %arg9[%c0_147, %c0_148, %c0_149] : memref<4x1x8xf32, #tpu.memory_space<vmem>>, vector<1x1x8xf32>
    %184 = vector.shape_cast %183 : vector<1x1x8xf32> to vector<1x8xf32>
    %185 = vector.broadcast %184 : vector<1x8xf32> to vector<8x8xf32>
    %186 = arith.addf %182, %185 : vector<8x8xf32>
    %cst_150 = arith.constant dense<0.000000e+00> : vector<8x8xf32>
    %187 = tpu.matmul %172, %179, %cst_150 {dimension_numbers = #tpu.dot_dimension_numbers<[1], [1], [0], [0], [0, 0, 1, 0], [], []>} : vector<8x8xf32>, vector<8x8xf32>, vector<8x8xf32> -> vector<8x8xf32>
    %cst_151 = arith.constant dense<0xFF800000> : vector<8xf32>
    %188 = vector.multi_reduction <maximumf>, %187, %cst_151 [1] : vector<8x8xf32> to vector<8xf32>
    %189 = vector.shape_cast %188 : vector<8xf32> to vector<8x1xf32>
    %190 = vector.broadcast %189 : vector<8x1xf32> to vector<8x8xf32>
    %191 = arith.subf %187, %190 : vector<8x8xf32>
    %192 = math.exp %191 : vector<8x8xf32>
    %cst_152 = arith.constant dense<0.000000e+00> : vector<8xf32>
    %193 = vector.multi_reduction <add>, %192, %cst_152 [1] : vector<8x8xf32> to vector<8xf32>
    %194 = vector.shape_cast %193 : vector<8xf32> to vector<8x1xf32>
    %195 = vector.broadcast %194 : vector<8x1xf32> to vector<8x8xf32>
    %196 = arith.divf %192, %195 : vector<8x8xf32>
    %cst_153 = arith.constant dense<0.000000e+00> : vector<8x8xf32>
    %197 = tpu.matmul %196, %186, %cst_153 {dimension_numbers = #tpu.dot_dimension_numbers<[1], [0], [0], [1], [0, 0, 1, 1], [], []>} : vector<8x8xf32>, vector<8x8xf32>, vector<8x8xf32> -> vector<8x8xf32>
    %c0_154 = arith.constant 0 : index
    %c0_155 = arith.constant 0 : index
    %c0_156 = arith.constant 0 : index
    %198 = vector.load %arg10[%c0_154, %c0_155, %c0_156] : memref<4x8x32xf32, #tpu.memory_space<vmem>>, vector<1x8x32xf32>
    %199 = vector.shape_cast %198 : vector<1x8x32xf32> to vector<8x32xf32>
    %cst_157 = arith.constant dense<0.000000e+00> : vector<8x32xf32>
    %200 = tpu.matmul %197, %199, %cst_157 {dimension_numbers = #tpu.dot_dimension_numbers<[1], [0], [0], [1], [0, 0, 1, 1], [], []>} : vector<8x8xf32>, vector<8x32xf32>, vector<8x32xf32> -> vector<8x32xf32>
    %c1_158 = arith.constant 1 : index
    %c0_159 = arith.constant 0 : index
    %c0_160 = arith.constant 0 : index
    %201 = vector.load %arg4[%c1_158, %c0_159, %c0_160] : memref<4x32x8xf32, #tpu.memory_space<vmem>>, vector<1x32x8xf32>
    %202 = vector.shape_cast %201 : vector<1x32x8xf32> to vector<32x8xf32>
    %cst_161 = arith.constant dense<0.000000e+00> : vector<8x8xf32>
    %203 = tpu.matmul %163, %202, %cst_161 {dimension_numbers = #tpu.dot_dimension_numbers<[1], [0], [0], [1], [0, 0, 1, 1], [], []>} : vector<8x32xf32>, vector<32x8xf32>, vector<8x8xf32> -> vector<8x8xf32>
    %c1_162 = arith.constant 1 : index
    %c0_163 = arith.constant 0 : index
    %c0_164 = arith.constant 0 : index
    %204 = vector.load %arg5[%c1_162, %c0_163, %c0_164] : memref<4x1x8xf32, #tpu.memory_space<vmem>>, vector<1x1x8xf32>
    %205 = vector.shape_cast %204 : vector<1x1x8xf32> to vector<1x8xf32>
    %206 = vector.broadcast %205 : vector<1x8xf32> to vector<8x8xf32>
    %207 = arith.addf %203, %206 : vector<8x8xf32>
    %cst_165 = arith.constant 0.353553385 : f32
    %208 = vector.broadcast %cst_165 : f32 to vector<8x8xf32>
    %209 = arith.mulf %207, %208 : vector<8x8xf32>
    %c1_166 = arith.constant 1 : index
    %c0_167 = arith.constant 0 : index
    %c0_168 = arith.constant 0 : index
    %210 = vector.load %arg6[%c1_166, %c0_167, %c0_168] : memref<4x32x8xf32, #tpu.memory_space<vmem>>, vector<1x32x8xf32>
    %211 = vector.shape_cast %210 : vector<1x32x8xf32> to vector<32x8xf32>
    %cst_169 = arith.constant dense<0.000000e+00> : vector<8x8xf32>
    %212 = tpu.matmul %163, %211, %cst_169 {dimension_numbers = #tpu.dot_dimension_numbers<[1], [0], [0], [1], [0, 0, 1, 1], [], []>} : vector<8x32xf32>, vector<32x8xf32>, vector<8x8xf32> -> vector<8x8xf32>
    %c1_170 = arith.constant 1 : index
    %c0_171 = arith.constant 0 : index
    %c0_172 = arith.constant 0 : index
    %213 = vector.load %arg7[%c1_170, %c0_171, %c0_172] : memref<4x1x8xf32, #tpu.memory_space<vmem>>, vector<1x1x8xf32>
    %214 = vector.shape_cast %213 : vector<1x1x8xf32> to vector<1x8xf32>
    %215 = vector.broadcast %214 : vector<1x8xf32> to vector<8x8xf32>
    %216 = arith.addf %212, %215 : vector<8x8xf32>
    %c1_173 = arith.constant 1 : index
    %c0_174 = arith.constant 0 : index
    %c0_175 = arith.constant 0 : index
    %217 = vector.load %arg8[%c1_173, %c0_174, %c0_175] : memref<4x32x8xf32, #tpu.memory_space<vmem>>, vector<1x32x8xf32>
    %218 = vector.shape_cast %217 : vector<1x32x8xf32> to vector<32x8xf32>
    %cst_176 = arith.constant dense<0.000000e+00> : vector<8x8xf32>
    %219 = tpu.matmul %163, %218, %cst_176 {dimension_numbers = #tpu.dot_dimension_numbers<[1], [0], [0], [1], [0, 0, 1, 1], [], []>} : vector<8x32xf32>, vector<32x8xf32>, vector<8x8xf32> -> vector<8x8xf32>
    %c1_177 = arith.constant 1 : index
    %c0_178 = arith.constant 0 : index
    %c0_179 = arith.constant 0 : index
    %220 = vector.load %arg9[%c1_177, %c0_178, %c0_179] : memref<4x1x8xf32, #tpu.memory_space<vmem>>, vector<1x1x8xf32>
    %221 = vector.shape_cast %220 : vector<1x1x8xf32> to vector<1x8xf32>
    %222 = vector.broadcast %221 : vector<1x8xf32> to vector<8x8xf32>
    %223 = arith.addf %219, %222 : vector<8x8xf32>
    %cst_180 = arith.constant dense<0.000000e+00> : vector<8x8xf32>
    %224 = tpu.matmul %209, %216, %cst_180 {dimension_numbers = #tpu.dot_dimension_numbers<[1], [1], [0], [0], [0, 0, 1, 0], [], []>} : vector<8x8xf32>, vector<8x8xf32>, vector<8x8xf32> -> vector<8x8xf32>
    %cst_181 = arith.constant dense<0xFF800000> : vector<8xf32>
    %225 = vector.multi_reduction <maximumf>, %224, %cst_181 [1] : vector<8x8xf32> to vector<8xf32>
    %226 = vector.shape_cast %225 : vector<8xf32> to vector<8x1xf32>
    %227 = vector.broadcast %226 : vector<8x1xf32> to vector<8x8xf32>
    %228 = arith.subf %224, %227 : vector<8x8xf32>
    %229 = math.exp %228 : vector<8x8xf32>
    %cst_182 = arith.constant dense<0.000000e+00> : vector<8xf32>
    %230 = vector.multi_reduction <add>, %229, %cst_182 [1] : vector<8x8xf32> to vector<8xf32>
    %231 = vector.shape_cast %230 : vector<8xf32> to vector<8x1xf32>
    %232 = vector.broadcast %231 : vector<8x1xf32> to vector<8x8xf32>
    %233 = arith.divf %229, %232 : vector<8x8xf32>
    %cst_183 = arith.constant dense<0.000000e+00> : vector<8x8xf32>
    %234 = tpu.matmul %233, %223, %cst_183 {dimension_numbers = #tpu.dot_dimension_numbers<[1], [0], [0], [1], [0, 0, 1, 1], [], []>} : vector<8x8xf32>, vector<8x8xf32>, vector<8x8xf32> -> vector<8x8xf32>
    %c1_184 = arith.constant 1 : index
    %c0_185 = arith.constant 0 : index
    %c0_186 = arith.constant 0 : index
    %235 = vector.load %arg10[%c1_184, %c0_185, %c0_186] : memref<4x8x32xf32, #tpu.memory_space<vmem>>, vector<1x8x32xf32>
    %236 = vector.shape_cast %235 : vector<1x8x32xf32> to vector<8x32xf32>
    %cst_187 = arith.constant dense<0.000000e+00> : vector<8x32xf32>
    %237 = tpu.matmul %234, %236, %cst_187 {dimension_numbers = #tpu.dot_dimension_numbers<[1], [0], [0], [1], [0, 0, 1, 1], [], []>} : vector<8x8xf32>, vector<8x32xf32>, vector<8x32xf32> -> vector<8x32xf32>
    %238 = arith.addf %200, %237 : vector<8x32xf32>
    %c2_188 = arith.constant 2 : index
    %c0_189 = arith.constant 0 : index
    %c0_190 = arith.constant 0 : index
    %239 = vector.load %arg4[%c2_188, %c0_189, %c0_190] : memref<4x32x8xf32, #tpu.memory_space<vmem>>, vector<1x32x8xf32>
    %240 = vector.shape_cast %239 : vector<1x32x8xf32> to vector<32x8xf32>
    %cst_191 = arith.constant dense<0.000000e+00> : vector<8x8xf32>
    %241 = tpu.matmul %163, %240, %cst_191 {dimension_numbers = #tpu.dot_dimension_numbers<[1], [0], [0], [1], [0, 0, 1, 1], [], []>} : vector<8x32xf32>, vector<32x8xf32>, vector<8x8xf32> -> vector<8x8xf32>
    %c2_192 = arith.constant 2 : index
    %c0_193 = arith.constant 0 : index
    %c0_194 = arith.constant 0 : index
    %242 = vector.load %arg5[%c2_192, %c0_193, %c0_194] : memref<4x1x8xf32, #tpu.memory_space<vmem>>, vector<1x1x8xf32>
    %243 = vector.shape_cast %242 : vector<1x1x8xf32> to vector<1x8xf32>
    %244 = vector.broadcast %243 : vector<1x8xf32> to vector<8x8xf32>
    %245 = arith.addf %241, %244 : vector<8x8xf32>
    %cst_195 = arith.constant 0.353553385 : f32
    %246 = vector.broadcast %cst_195 : f32 to vector<8x8xf32>
    %247 = arith.mulf %245, %246 : vector<8x8xf32>
    %c2_196 = arith.constant 2 : index
    %c0_197 = arith.constant 0 : index
    %c0_198 = arith.constant 0 : index
    %248 = vector.load %arg6[%c2_196, %c0_197, %c0_198] : memref<4x32x8xf32, #tpu.memory_space<vmem>>, vector<1x32x8xf32>
    %249 = vector.shape_cast %248 : vector<1x32x8xf32> to vector<32x8xf32>
    %cst_199 = arith.constant dense<0.000000e+00> : vector<8x8xf32>
    %250 = tpu.matmul %163, %249, %cst_199 {dimension_numbers = #tpu.dot_dimension_numbers<[1], [0], [0], [1], [0, 0, 1, 1], [], []>} : vector<8x32xf32>, vector<32x8xf32>, vector<8x8xf32> -> vector<8x8xf32>
    %c2_200 = arith.constant 2 : index
    %c0_201 = arith.constant 0 : index
    %c0_202 = arith.constant 0 : index
    %251 = vector.load %arg7[%c2_200, %c0_201, %c0_202] : memref<4x1x8xf32, #tpu.memory_space<vmem>>, vector<1x1x8xf32>
    %252 = vector.shape_cast %251 : vector<1x1x8xf32> to vector<1x8xf32>
    %253 = vector.broadcast %252 : vector<1x8xf32> to vector<8x8xf32>
    %254 = arith.addf %250, %253 : vector<8x8xf32>
    %c2_203 = arith.constant 2 : index
    %c0_204 = arith.constant 0 : index
    %c0_205 = arith.constant 0 : index
    %255 = vector.load %arg8[%c2_203, %c0_204, %c0_205] : memref<4x32x8xf32, #tpu.memory_space<vmem>>, vector<1x32x8xf32>
    %256 = vector.shape_cast %255 : vector<1x32x8xf32> to vector<32x8xf32>
    %cst_206 = arith.constant dense<0.000000e+00> : vector<8x8xf32>
    %257 = tpu.matmul %163, %256, %cst_206 {dimension_numbers = #tpu.dot_dimension_numbers<[1], [0], [0], [1], [0, 0, 1, 1], [], []>} : vector<8x32xf32>, vector<32x8xf32>, vector<8x8xf32> -> vector<8x8xf32>
    %c2_207 = arith.constant 2 : index
    %c0_208 = arith.constant 0 : index
    %c0_209 = arith.constant 0 : index
    %258 = vector.load %arg9[%c2_207, %c0_208, %c0_209] : memref<4x1x8xf32, #tpu.memory_space<vmem>>, vector<1x1x8xf32>
    %259 = vector.shape_cast %258 : vector<1x1x8xf32> to vector<1x8xf32>
    %260 = vector.broadcast %259 : vector<1x8xf32> to vector<8x8xf32>
    %261 = arith.addf %257, %260 : vector<8x8xf32>
    %cst_210 = arith.constant dense<0.000000e+00> : vector<8x8xf32>
    %262 = tpu.matmul %247, %254, %cst_210 {dimension_numbers = #tpu.dot_dimension_numbers<[1], [1], [0], [0], [0, 0, 1, 0], [], []>} : vector<8x8xf32>, vector<8x8xf32>, vector<8x8xf32> -> vector<8x8xf32>
    %cst_211 = arith.constant dense<0xFF800000> : vector<8xf32>
    %263 = vector.multi_reduction <maximumf>, %262, %cst_211 [1] : vector<8x8xf32> to vector<8xf32>
    %264 = vector.shape_cast %263 : vector<8xf32> to vector<8x1xf32>
    %265 = vector.broadcast %264 : vector<8x1xf32> to vector<8x8xf32>
    %266 = arith.subf %262, %265 : vector<8x8xf32>
    %267 = math.exp %266 : vector<8x8xf32>
    %cst_212 = arith.constant dense<0.000000e+00> : vector<8xf32>
    %268 = vector.multi_reduction <add>, %267, %cst_212 [1] : vector<8x8xf32> to vector<8xf32>
    %269 = vector.shape_cast %268 : vector<8xf32> to vector<8x1xf32>
    %270 = vector.broadcast %269 : vector<8x1xf32> to vector<8x8xf32>
    %271 = arith.divf %267, %270 : vector<8x8xf32>
    %cst_213 = arith.constant dense<0.000000e+00> : vector<8x8xf32>
    %272 = tpu.matmul %271, %261, %cst_213 {dimension_numbers = #tpu.dot_dimension_numbers<[1], [0], [0], [1], [0, 0, 1, 1], [], []>} : vector<8x8xf32>, vector<8x8xf32>, vector<8x8xf32> -> vector<8x8xf32>
    %c2_214 = arith.constant 2 : index
    %c0_215 = arith.constant 0 : index
    %c0_216 = arith.constant 0 : index
    %273 = vector.load %arg10[%c2_214, %c0_215, %c0_216] : memref<4x8x32xf32, #tpu.memory_space<vmem>>, vector<1x8x32xf32>
    %274 = vector.shape_cast %273 : vector<1x8x32xf32> to vector<8x32xf32>
    %cst_217 = arith.constant dense<0.000000e+00> : vector<8x32xf32>
    %275 = tpu.matmul %272, %274, %cst_217 {dimension_numbers = #tpu.dot_dimension_numbers<[1], [0], [0], [1], [0, 0, 1, 1], [], []>} : vector<8x8xf32>, vector<8x32xf32>, vector<8x32xf32> -> vector<8x32xf32>
    %276 = arith.addf %238, %275 : vector<8x32xf32>
    %c3_218 = arith.constant 3 : index
    %c0_219 = arith.constant 0 : index
    %c0_220 = arith.constant 0 : index
    %277 = vector.load %arg4[%c3_218, %c0_219, %c0_220] : memref<4x32x8xf32, #tpu.memory_space<vmem>>, vector<1x32x8xf32>
    %278 = vector.shape_cast %277 : vector<1x32x8xf32> to vector<32x8xf32>
    %cst_221 = arith.constant dense<0.000000e+00> : vector<8x8xf32>
    %279 = tpu.matmul %163, %278, %cst_221 {dimension_numbers = #tpu.dot_dimension_numbers<[1], [0], [0], [1], [0, 0, 1, 1], [], []>} : vector<8x32xf32>, vector<32x8xf32>, vector<8x8xf32> -> vector<8x8xf32>
    %c3_222 = arith.constant 3 : index
    %c0_223 = arith.constant 0 : index
    %c0_224 = arith.constant 0 : index
    %280 = vector.load %arg5[%c3_222, %c0_223, %c0_224] : memref<4x1x8xf32, #tpu.memory_space<vmem>>, vector<1x1x8xf32>
    %281 = vector.shape_cast %280 : vector<1x1x8xf32> to vector<1x8xf32>
    %282 = vector.broadcast %281 : vector<1x8xf32> to vector<8x8xf32>
    %283 = arith.addf %279, %282 : vector<8x8xf32>
    %cst_225 = arith.constant 0.353553385 : f32
    %284 = vector.broadcast %cst_225 : f32 to vector<8x8xf32>
    %285 = arith.mulf %283, %284 : vector<8x8xf32>
    %c3_226 = arith.constant 3 : index
    %c0_227 = arith.constant 0 : index
    %c0_228 = arith.constant 0 : index
    %286 = vector.load %arg6[%c3_226, %c0_227, %c0_228] : memref<4x32x8xf32, #tpu.memory_space<vmem>>, vector<1x32x8xf32>
    %287 = vector.shape_cast %286 : vector<1x32x8xf32> to vector<32x8xf32>
    %cst_229 = arith.constant dense<0.000000e+00> : vector<8x8xf32>
    %288 = tpu.matmul %163, %287, %cst_229 {dimension_numbers = #tpu.dot_dimension_numbers<[1], [0], [0], [1], [0, 0, 1, 1], [], []>} : vector<8x32xf32>, vector<32x8xf32>, vector<8x8xf32> -> vector<8x8xf32>
    %c3_230 = arith.constant 3 : index
    %c0_231 = arith.constant 0 : index
    %c0_232 = arith.constant 0 : index
    %289 = vector.load %arg7[%c3_230, %c0_231, %c0_232] : memref<4x1x8xf32, #tpu.memory_space<vmem>>, vector<1x1x8xf32>
    %290 = vector.shape_cast %289 : vector<1x1x8xf32> to vector<1x8xf32>
    %291 = vector.broadcast %290 : vector<1x8xf32> to vector<8x8xf32>
    %292 = arith.addf %288, %291 : vector<8x8xf32>
    %c3_233 = arith.constant 3 : index
    %c0_234 = arith.constant 0 : index
    %c0_235 = arith.constant 0 : index
    %293 = vector.load %arg8[%c3_233, %c0_234, %c0_235] : memref<4x32x8xf32, #tpu.memory_space<vmem>>, vector<1x32x8xf32>
    %294 = vector.shape_cast %293 : vector<1x32x8xf32> to vector<32x8xf32>
    %cst_236 = arith.constant dense<0.000000e+00> : vector<8x8xf32>
    %295 = tpu.matmul %163, %294, %cst_236 {dimension_numbers = #tpu.dot_dimension_numbers<[1], [0], [0], [1], [0, 0, 1, 1], [], []>} : vector<8x32xf32>, vector<32x8xf32>, vector<8x8xf32> -> vector<8x8xf32>
    %c3_237 = arith.constant 3 : index
    %c0_238 = arith.constant 0 : index
    %c0_239 = arith.constant 0 : index
    %296 = vector.load %arg9[%c3_237, %c0_238, %c0_239] : memref<4x1x8xf32, #tpu.memory_space<vmem>>, vector<1x1x8xf32>
    %297 = vector.shape_cast %296 : vector<1x1x8xf32> to vector<1x8xf32>
    %298 = vector.broadcast %297 : vector<1x8xf32> to vector<8x8xf32>
    %299 = arith.addf %295, %298 : vector<8x8xf32>
    %cst_240 = arith.constant dense<0.000000e+00> : vector<8x8xf32>
    %300 = tpu.matmul %285, %292, %cst_240 {dimension_numbers = #tpu.dot_dimension_numbers<[1], [1], [0], [0], [0, 0, 1, 0], [], []>} : vector<8x8xf32>, vector<8x8xf32>, vector<8x8xf32> -> vector<8x8xf32>
    %cst_241 = arith.constant dense<0xFF800000> : vector<8xf32>
    %301 = vector.multi_reduction <maximumf>, %300, %cst_241 [1] : vector<8x8xf32> to vector<8xf32>
    %302 = vector.shape_cast %301 : vector<8xf32> to vector<8x1xf32>
    %303 = vector.broadcast %302 : vector<8x1xf32> to vector<8x8xf32>
    %304 = arith.subf %300, %303 : vector<8x8xf32>
    %305 = math.exp %304 : vector<8x8xf32>
    %cst_242 = arith.constant dense<0.000000e+00> : vector<8xf32>
    %306 = vector.multi_reduction <add>, %305, %cst_242 [1] : vector<8x8xf32> to vector<8xf32>
    %307 = vector.shape_cast %306 : vector<8xf32> to vector<8x1xf32>
    %308 = vector.broadcast %307 : vector<8x1xf32> to vector<8x8xf32>
    %309 = arith.divf %305, %308 : vector<8x8xf32>
    %cst_243 = arith.constant dense<0.000000e+00> : vector<8x8xf32>
    %310 = tpu.matmul %309, %299, %cst_243 {dimension_numbers = #tpu.dot_dimension_numbers<[1], [0], [0], [1], [0, 0, 1, 1], [], []>} : vector<8x8xf32>, vector<8x8xf32>, vector<8x8xf32> -> vector<8x8xf32>
    %c3_244 = arith.constant 3 : index
    %c0_245 = arith.constant 0 : index
    %c0_246 = arith.constant 0 : index
    %311 = vector.load %arg10[%c3_244, %c0_245, %c0_246] : memref<4x8x32xf32, #tpu.memory_space<vmem>>, vector<1x8x32xf32>
    %312 = vector.shape_cast %311 : vector<1x8x32xf32> to vector<8x32xf32>
    %cst_247 = arith.constant dense<0.000000e+00> : vector<8x32xf32>
    %313 = tpu.matmul %310, %312, %cst_247 {dimension_numbers = #tpu.dot_dimension_numbers<[1], [0], [0], [1], [0, 0, 1, 1], [], []>} : vector<8x8xf32>, vector<8x32xf32>, vector<8x32xf32> -> vector<8x32xf32>
    %314 = arith.addf %276, %313 : vector<8x32xf32>
    %315 = vector.broadcast %7 : vector<1x32xf32> to vector<8x32xf32>
    %316 = arith.addf %314, %315 : vector<8x32xf32>
    %c8 = arith.constant 8 : index
    %c0_248 = arith.constant 0 : index
    %317 = vector.load %arg13[%c8, %c0_248] : memref<16x32xf32, #tpu.memory_space<vmem>>, vector<8x32xf32>
    tpu.vector_store %arg13[%c8, %c0_248], %316 {strides = array<i32>} : memref<16x32xf32, #tpu.memory_space<vmem>>, vector<8x32xf32>,
    return
  }
  func.func @transform_0(%arg0: i32) -> (i32, i32) {
    %c0_i32 = arith.constant 0 : i32
    %c0_i32_0 = arith.constant 0 : i32
    return %arg0, %c0_i32 : i32, i32
  }
  func.func @transform_1(%arg0: i32) -> (i32, i32) {
    %c0_i32 = arith.constant 0 : i32
    %c0_i32_0 = arith.constant 0 : i32
    %c0_i32_1 = arith.constant 0 : i32
    return %c0_i32, %c0_i32_0 : i32, i32
  }
  func.func @transform_2(%arg0: i32) -> (i32, i32) {
    %c0_i32 = arith.constant 0 : i32
    %c0_i32_0 = arith.constant 0 : i32
    %c0_i32_1 = arith.constant 0 : i32
    return %c0_i32, %c0_i32_0 : i32, i32
  }
  func.func @transform_3(%arg0: i32) -> (i32, i32, i32) {
    %c0_i32 = arith.constant 0 : i32
    %c0_i32_0 = arith.constant 0 : i32
    %c0_i32_1 = arith.constant 0 : i32
    %c0_i32_2 = arith.constant 0 : i32
    return %c0_i32, %c0_i32_0, %c0_i32_1 : i32, i32, i32
  }
  func.func @transform_4(%arg0: i32) -> (i32, i32, i32) {
    %c0_i32 = arith.constant 0 : i32
    %c0_i32_0 = arith.constant 0 : i32
    %c0_i32_1 = arith.constant 0 : i32
    %c0_i32_2 = arith.constant 0 : i32
    return %c0_i32, %c0_i32_0, %c0_i32_1 : i32, i32, i32
  }
  func.func @transform_5(%arg0: i32) -> (i32, i32, i32) {
    %c0_i32 = arith.constant 0 : i32
    %c0_i32_0 = arith.constant 0 : i32
    %c0_i32_1 = arith.constant 0 : i32
    %c0_i32_2 = arith.constant 0 : i32
    return %c0_i32, %c0_i32_0, %c0_i32_1 : i32, i32, i32
  }
  func.func @transform_6(%arg0: i32) -> (i32, i32, i32) {
    %c0_i32 = arith.constant 0 : i32
    %c0_i32_0 = arith.constant 0 : i32
    %c0_i32_1 = arith.constant 0 : i32
    %c0_i32_2 = arith.constant 0 : i32
    return %c0_i32, %c0_i32_0, %c0_i32_1 : i32, i32, i32
  }
  func.func @transform_7(%arg0: i32) -> (i32, i32, i32) {
    %c0_i32 = arith.constant 0 : i32
    %c0_i32_0 = arith.constant 0 : i32
    %c0_i32_1 = arith.constant 0 : i32
    %c0_i32_2 = arith.constant 0 : i32
    return %c0_i32, %c0_i32_0, %c0_i32_1 : i32, i32, i32
  }
  func.func @transform_8(%arg0: i32) -> (i32, i32, i32) {
    %c0_i32 = arith.constant 0 : i32
    %c0_i32_0 = arith.constant 0 : i32
    %c0_i32_1 = arith.constant 0 : i32
    %c0_i32_2 = arith.constant 0 : i32
    return %c0_i32, %c0_i32_0, %c0_i32_1 : i32, i32, i32
  }
  func.func @transform_9(%arg0: i32) -> (i32, i32, i32) {
    %c0_i32 = arith.constant 0 : i32
    %c0_i32_0 = arith.constant 0 : i32
    %c0_i32_1 = arith.constant 0 : i32
    %c0_i32_2 = arith.constant 0 : i32
    return %c0_i32, %c0_i32_0, %c0_i32_1 : i32, i32, i32
  }
  func.func @transform_10(%arg0: i32) -> (i32, i32) {
    %c0_i32 = arith.constant 0 : i32
    %c0_i32_0 = arith.constant 0 : i32
    %c0_i32_1 = arith.constant 0 : i32
    return %c0_i32, %c0_i32_0 : i32, i32
  }
  func.func @transform_11(%arg0: i32) -> (i32, i32) {
    %c0_i32 = arith.constant 0 : i32
    %c0_i32_0 = arith.constant 0 : i32
    return %arg0, %c0_i32 : i32, i32
  }
  func.func @transform_12(%arg0: i32) -> (i32, i32) {
    %c0_i32 = arith.constant 0 : i32
    %c0_i32_0 = arith.constant 0 : i32
    return %arg0, %c0_i32 : i32, i32
  }
}

</mosaic_0001>

<bundles_post_ra>
// kernel: attention_out_computation_fwd.1
= control target key start
LH: loop header
LB: loop body
LE: loop exit
PB: predicated region body
PF: predicated region fallthrough
CT: control target
= control target key end

     0   :  { %vm57_vm0 = vcmask 523264   ;;  %v4973_v3 = vmov 0.0|0.0   ;;  %vm4974_vm1 = vmmov 0   ;;  %v4975_v27 = vmov 0.0   ;;  %s5727_s1 = inlined_call_operand.vmem [shape: f32[64,32], index: 1, kind: input, shape index: {}]   ;;  %s5728_s0 = inlined_call_operand.vmem [shape: f32[16,64], index: 0, kind: input, shape index: {}]   ;;  %s5729_s3 = inlined_call_operand.vmem [shape: f32[4,32,8], index: 3, kind: input, shape index: {}]   ;;  %s5730_s7 = inlined_call_operand.vmem [shape: f32[4,32,8], index: 7, kind: input, shape index: {}]   ;;  %s5731_s2 = inlined_call_operand.vmem [shape: f32[1,32], index: 2, kind: input, shape index: {}]   ;;  %s5732_s5 = inlined_call_operand.vmem [shape: f32[4,32,8], index: 5, kind: input, shape index: {}]   ;;  %s5733_s11 = inlined_call_operand.vmem [shape: f32[16,32], index: 11, kind: output, shape index: {0}]   ;;  %s5734_s4 = inlined_call_operand.vmem [shape: f32[4,1,8], index: 4, kind: input, shape index: {}]   ;;  %s5735_s6 = inlined_call_operand.vmem [shape: f32[4,1,8], index: 6, kind: input, shape index: {}]   ;;  %s5736_s8 = inlined_call_operand.vmem [shape: f32[4,1,8], index: 8, kind: input, shape index: {}]   ;;  %s5737_s9 = inlined_call_operand.vmem [shape: f32[4,8,32], index: 9, kind: input, shape index: {}]   ;;  %s5738_s10 = inlined_call_operand.vmem [shape: f32[1,32], index: 10, kind: input, shape index: {}]   ;;  %s5739_s12 = inlined_call_operand.vmem [shape: f32[16,32], index: 12, kind: output, shape index: {1}]  }
   0x1   :  { %v42_v0 = vld [vmem:[%s5727_s1] sm:$0xff]  ;;  %v43_v1 = vld [vmem:[%s5727_s1 + $0x8] sm:$0xff]  ;;  %v44_v2 = vld [vmem:[%s5727_s1 + $0x10] sm:$0xff]  ;;  %4794 = vmatprep.subr.bf16.mxu1 %v4973_v3  ;;  %4402 = vmatprep.mubr.msk.f32.mxu1 %vm4974_vm1, %v4975_v27  ;;  %vm139_vm2 = vcmask 261120   ;;  %vm390_vm3 = vcmask 64512  }
   0x2   :  { %v4778_v4 = vpack.c.bf16 %v43_v1, %v42_v0  ;;  %v45_v5 = vld [vmem:[%s5727_s1 + $0x18] sm:$0xff]  ;;  %v46_v7 = vld [vmem:[%s5727_s1 + $0x20] sm:$0xff]  ;;  %v47_v8 = vld [vmem:[%s5727_s1 + $0x28] sm:$0xff] }
   0x3   :  { %v4782_v6 = vpack.c.bf16 %v45_v5, %v44_v2  ;;  %v40_v9 = vld [vmem:[%s5728_s0] sm:$0xff]  ;;  %v144_v11 = vld [vmem:[%s5729_s3 + $0x8] sm:$0xff]  ;;  %v4786_v13 = vpack.c.bf16 %v47_v8, %v46_v7  ;;  %v48_v14 = vld [vmem:[%s5727_s1 + $0x30] sm:$0xff] }
   0x4   :  { %4779 = vmatprep.subr.bf16.mxu0 %v4778_v4  ;;  %4391 = vmatprep.mubr.msk.f32.mxu0 %vm57_vm0, %v40_v9  ;;  %v143_v10 = vld [vmem:[%s5729_s3] sm:$0xff]  ;;  %v49_v15 = vld [vmem:[%s5727_s1 + $0x38] sm:$0xff]  ;;  %v310_v18 = vld [vmem:[%s5730_s7 + $0x8] sm:$0xff] }
   0x5   :  { %4781 = vmatpush3.bf16.msra.mxu0 %v4778_v4  ;;  %v5070_v12 = vpack.c.bf16 %v144_v11, %v143_v10  ;;  %v4790_v16 = vpack.c.bf16 %v49_v15, %v48_v14  ;;  %v309_v17 = vld [vmem:[%s5730_s7] sm:$0xff]  ;;  %v41_v19 = vld [vmem:[%s5728_s0 + $0x8] sm:$0xff]  ;;  %v145_v21 = vld [vmem:[%s5729_s3 + $0x10] sm:$0xff] }
   0x6   :  { %4783 = vmatprep.subr.bf16.mxu0 %v4782_v6  ;;  %v5089_v20 = vpack.c.bf16 %v310_v18, %v309_v17  ;;  %v146_v22 = vld [vmem:[%s5729_s3 + $0x18] sm:$0xff]  ;;  %v311_v23 = vld [vmem:[%s5730_s7 + $0x10] sm:$0xff]  ;;  %v4017_v28 = vld [vmem:[%s5731_s2] ss:$0 sm:$0xff] }
   0x7   :  { %4796 = vmatpush3.bf16.msra.mxu1 %v5070_v12  ;;  %v5104_v24 = vpack.c.bf16 %v146_v22, %v145_v21  ;;  %v312_v25 = vld [vmem:[%s5730_s7 + $0x18] sm:$0xff]  ;;  %v228_v29 = vld [vmem:[%s5732_s5] sm:$0xff]  ;;  %v229_v30 = vld [vmem:[%s5732_s5 + $0x8] sm:$0xff] }
   0x8   :  { %4797 = vmatprep.subr.bf16.mxu1 %v4973_v3  ;;  %v5109_v26 = vpack.c.bf16 %v312_v25, %v311_v23  ;;  %v4029_v31 = vld [vmem:[%s5729_s3 + $0x20] sm:$0xff]  ;;  %v4030_v32 = vld [vmem:[%s5729_s3 + $0x28] sm:$0xff]  ;;  %v5136_v36 = vpack.c.bf16 %v229_v30, %v228_v29  ;;  %v230_v38 = vld [vmem:[%s5732_s5 + $0x10] sm:$0xff] }
   0x9   :  { %4785 = vmatpush3.bf16.msra.mxu0 %v4782_v6  ;;  %v5138_v37 = vpack.c.bf16 %v4030_v32, %v4029_v31  ;;  %v231_v40 = vld [vmem:[%s5732_s5 + $0x18] sm:$0xff]  ;;  %v4031_v41 = vld [vmem:[%s5729_s3 + $0x30] sm:$0xff]  ;;  %v4043_v45 = vld [vmem:[%s5730_s7 + $0x20] sm:$0xff] }
   0xa   :  { %4787 = vmatprep.subr.bf16.mxu0 %v4786_v13  ;;  %v4032_v42 = vld [vmem:[%s5729_s3 + $0x38] sm:$0xff]  ;;  %v5170_v43 = vpack.c.bf16 %v231_v40, %v230_v38  ;;  %v4044_v46 = vld [vmem:[%s5730_s7 + $0x28] sm:$0xff]  ;;  %v4045_v48 = vld [vmem:[%s5730_s7 + $0x30] sm:$0xff] }
   0xb   :  { %4799 = vmatpush3.bf16.msra.mxu1 %v5104_v24  ;;  %v5172_v44 = vpack.c.bf16 %v4032_v42, %v4031_v41  ;;  %v5188_v47 = vpack.c.bf16 %v4044_v46, %v4043_v45  ;;  %v4046_v49 = vld [vmem:[%s5730_s7 + $0x38] sm:$0xff]  ;;  %v5219_v55 = vld [vmem:[%s5734_s4] ss:$0 sm:$0xff]  ;;  %v4038_v21 = vld [vmem:[%s5732_s5 + $0x30] sm:$0xff] }
   0xc   :  { %4800 = vmatprep.subr.bf16.mxu1 %v4973_v3  ;;  %v5203_v50 = vpack.c.bf16 %v4046_v49, %v4045_v48  ;;  %v5224_v56 = vld [vmem:[%s5735_s6] ss:$0 sm:$0xff]  ;;  %v4039_v22 = vld [vmem:[%s5732_s5 + $0x38] sm:$0xff]  ;;  %v5272_v29 = vld [vmem:[%s5734_s4 + $0x1] ss:$0 sm:$0xff] }
   0xd   :  { %4789 = vmatpush3.bf16.msra.mxu0 %v4786_v13  ;;  %v5231_v63 = vld [vmem:[%s5736_s8] ss:$0 sm:$0xff]  ;;  %v5258_v23 = vpack.c.bf16 %v4039_v22, %v4038_v21  ;;  %v5277_v30 = vld [vmem:[%s5735_s6 + $0x1] ss:$0 sm:$0xff]  ;;  %v4072_v21 = vld [vmem:[%s5730_s7 + $0x50] sm:$0xff] }
   0xe   :  { %4791 = vmatprep.subr.bf16.mxu0 %v4790_v16  ;;  %v4036_v15 = vld [vmem:[%s5732_s5 + $0x20] sm:$0xff]  ;;  %v4073_v22 = vld [vmem:[%s5730_s7 + $0x58] sm:$0xff] }
   0xf   :  { %v5284_v38 = vld [vmem:[%s5736_s8 + $0x1] ss:$0 sm:$0xff] }
  0x11   :  { %4793 = vmatpush3.bf16.msra.mxu0 %v4790_v16  ;;  %v4037_v16 = vld [vmem:[%s5732_s5 + $0x28] sm:$0xff] }
  0x12   :  { %4806 = vmatprep.subr.bf16.mxu0 %v4973_v3  ;;  %v5248_v18 = vpack.c.bf16 %v4037_v16, %v4036_v15  ;;  %v4071_v15 = vld [vmem:[%s5730_s7 + $0x48] sm:$0xff] }
  0x14   :  { %4392 = vmatmul.mubr.msk.f32.vlgmr.msra.gmra.mrb[0].mxu0 %vm57_vm0, %v41_v19 }
  0x15   :  { %4808 = vmatpush3.bf16.msra.mxu0 %v5089_v20  ;;  %4424 = vmatprep.mubr.msk.f32.mxu0 %vm4974_vm1, %v4975_v27 }
  0x16   :  { %4809 = vmatprep.subr.bf16.mxu0 %v4973_v3 }
  0x19   :  { %4811 = vmatpush3.bf16.msra.mxu0 %v5109_v26 }
  0x1a   :  { %4812 = vmatprep.subr.bf16.mxu0 %v4973_v3 }
  0xe7   :  { %v4393_v33 = vpop.f32.mrb[0].mxu0 }
  0xe8   :  { %v5134_v34 = vadd.f32 %v4393_v33, %v4017_v28  ;;  %v130_v35 = vpop.f32.mrb[1].mxu0 }
  0xe9   :  { %v5143_v39 = vadd.f32 %v4017_v28, %v130_v35 }
  0xea   :  { %141 = vst.msk [vmem:[%s5733_s11 + $0x8] sm:$0xff] %vm139_vm2, %v5134_v34 }
  0xeb   :  { %140 = vst.msk [vmem:[%s5733_s11] sm:$0xff] %vm139_vm2, %v5143_v39  ;;  %4403 = vmatmul.mubr.msk.f32.vlgmr.msra.gmra.mrb[0].mxu1 %vm139_vm2, %v5143_v39  ;;  %4425 = vmatmul.mubr.msk.f32.vlgmr.msra.gmra.mrb[2].mxu0 %vm139_vm2, %v5143_v39 }
  0xec   :  { %4802 = vmatpush3.bf16.msra.mxu1 %v5136_v36  ;;  %4814 = vmatpush3.bf16.msra.mxu0 %v5138_v37 }
  0xed   :  { %4803 = vmatprep.subr.bf16.mxu1 %v4973_v3  ;;  %4815 = vmatprep.subr.bf16.mxu0 %v4973_v3 }
  0xee   :  { %4413 = vmatprep.mubr.msk.f32.mxu1 %vm4974_vm1, %v4975_v27  ;;  %4445 = vmatprep.mubr.msk.f32.mxu0 %vm4974_vm1, %v4975_v27 }
  0xf0   :  { %4805 = vmatpush3.bf16.msra.mxu1 %v5170_v43  ;;  %4817 = vmatpush3.bf16.msra.mxu0 %v5172_v44 }
  0xf1   :  { %4824 = vmatprep.subr.bf16.mxu0 %v4973_v3  ;;  %4427 = vmatprep.subr.mxu1 %v4975_v27 }
  0xf3   :  { %4414 = vmatmul.mubr.msk.f32.vlgmr.msra.gmra.mrb[2].mxu1 %vm139_vm2, %v5143_v39  ;;  %4446 = vmatmul.mubr.msk.f32.vlgmr.msra.gmra.mrb[4].mxu0 %vm139_vm2, %v5143_v39 }
  0xf4   :  { %4826 = vmatpush3.bf16.msra.mxu0 %v5188_v47  ;;  %4467 = vmatprep.mubr.msk.f32.mxu0 %vm4974_vm1, %v4975_v27 }
  0xf5   :  { %4827 = vmatprep.subr.bf16.mxu0 %v4973_v3  ;;  %4429 = vmatprep.mubr.msk.f32.mxu1 %vm4974_vm1, %v4975_v27 }
  0xf8   :  { %4829 = vmatpush3.bf16.msra.mxu0 %v5203_v50 }
  0xf9   :  { %4480 = vmatprep.subr.mxu0 %v4975_v27 }
  0xfb   :  { %4468 = vmatmul.mubr.msk.f32.vlgmr.msra.gmra.mrb[6].mxu0 %vm139_vm2, %v5143_v39 }
  0xfc   :  { %4482 = vmatprep.mubr.msk.f32.mxu0 %vm4974_vm1, %v4975_v27 }
 0x1be   :  { %v223_v51 = vpop.f32.mrb[0].mxu1  ;;  %v386_v52 = vpop.f32.mrb[2].mxu0 }
 0x1bf   :  { %v4404_v53 = vpop.f32.mrb[1].mxu1  ;;  %v4426_v54 = vpop.f32.mrb[3].mxu0  ;;  %v224_v57 = vadd.f32 %v5219_v55, %v223_v51  ;;  %v387_v1 = vadd.f32 %v5231_v63, %v386_v52 }
 0x1c0   :  { %v5298_v54 = vld [vmem:[%s5737_s9 + $0x8] sm:$0xff] }
 0x1c1   :  { %v227_v0 = vmul.f32 0.35355338, %v224_v57  ;;  %4481 = vmatpush3.msra.mxu0 %v5298_v54 }
 0x1c2   :  { %4830 = vmatprep.subr.bf16.mxu0 %v4973_v3 }
 0x1c6   :  { %v305_v58 = vpop.f32.mrb[2].mxu1  ;;  %v631_v59 = vpop.f32.mrb[4].mxu0 }
 0x1c7   :  { %v306_v60 = vadd.f32 %v5224_v56, %v305_v58  ;;  %v4415_v61 = vpop.f32.mrb[3].mxu1  ;;  %v4447_v62 = vpop.f32.mrb[5].mxu0  ;;  %v632_v31 = vadd.f32 %v5272_v29, %v631_v59 }
 0x1c8   :  { %v4063_v61 = vld [vmem:[%s5732_s5 + $0x40] sm:$0xff]  ;;  %v4064_v62 = vld [vmem:[%s5732_s5 + $0x48] sm:$0xff] }
 0x1c9   :  { %4428 = vmatpush3.xpose.msk.msra.mxu1 %vm390_vm3, %v306_v60  ;;  %v635_v40 = vmul.f32 0.35355338, %v632_v31  ;;  %v5305_v60 = vld [vmem:[%s5737_s9] sm:$0xff] }
 0x1ca   :  { %4432 = vmatprep.subr.mxu1 %v4975_v27 }
 0x1cc   :  { %4430 = vmatmul.mubr.msk.f32.vlgmr.msra.gmra.mrb[4].mxu1 %vm390_vm3, %v227_v0  ;;  %v5317_v0 = vpack.c.bf16 %v4064_v62, %v4063_v61 }
 0x1cd   :  { %4433 = vmatpush3.msra.mxu1 %v387_v1  ;;  %4434 = vmatprep.mubr.msk.f32.mxu1 %vm4974_vm1, %v4975_v27  ;;  %v4065_v1 = vld [vmem:[%s5732_s5 + $0x50] sm:$0xff] }
 0x1ce   :  { %v798_v2 = vpop.f32.mrb[6].mxu0  ;;  %4818 = vmatprep.subr.bf16.mxu1 %v4973_v3 }
 0x1cf   :  { %v4469_v4 = vpop.f32.mrb[7].mxu0  ;;  %v799_v41 = vadd.f32 %v5284_v38, %v798_v2  ;;  %v4066_v2 = vld [vmem:[%s5732_s5 + $0x58] sm:$0xff] }
 0x1d0   :  { %v5328_v4 = vpack.c.bf16 %v4066_v2, %v4065_v1 }
 0x29f   :  { %v463_v5 = vpop.f32.mrb[4].mxu1 }
 0x2a0   :  { %v4431_v6 = vpop.f32.mrb[5].mxu1  ;;  %v467_v7 = vsel %vm390_vm3, %v463_v5, -inf }
 0x2a1   :  { %468 = vmax.xlane.f32.xlu0 %v467_v7  ;;  %v4057_v6 = vld [vmem:[%s5729_s3 + $0x48] sm:$0xff] }
 0x32e   :  { %v469_v8 = vpop.xlane.xlu0 %468 }
 0x32f   :  { %v470_v9 = vsub.f32 %v463_v5, %v469_v8  ;;  %v4056_v5 = vld [vmem:[%s5729_s3 + $0x40] sm:$0xff]  ;;  %v4058_v8 = vld [vmem:[%s5729_s3 + $0x50] sm:$0xff] }
 0x330   :  { %v5345_v7 = vpack.c.bf16 %v4057_v6, %v4056_v5 }
 0x331   :  { %v471_v10 = vmul.f32 1.442695, %v470_v9  ;;  %v4059_v9 = vld [vmem:[%s5729_s3 + $0x58] sm:$0xff] }
 0x333   :  { %4941 = vpow2.f32 %v471_v10 }
 0x33d   :  { %v4942_v11 = vpop.eup %4941 }
 0x33e   :  { %v473_v13 = vsel %vm390_vm3, %v4942_v11, 0.0 }
 0x33f   :  { %474 = vadd.xlane.f32.xlu0 %v473_v13  ;;  %v5355_v13 = vpack.c.bf16 %v4059_v9, %v4058_v8  ;;  %v5421_v8 = vld [vmem:[%s5737_s9 + $0x10] sm:$0xff] }
 0x3cc   :  { %v475_v14 = vpop.xlane.xlu0 %474 }
 0x3cd   :  { %4943 = vrcp.f32 %v475_v14  ;;  %v4070_v14 = vld [vmem:[%s5730_s7 + $0x40] sm:$0xff] }
 0x3d7   :  { %v4944_v17 = vpop.eup %4943 }
 0x3d8   :  { %v477_v19 = vmul.f32 %v4944_v17, %v4942_v11 }
 0x3da   :  { %4435 = vmatmul.mubr.msk.f32.vlgmr.msra.gmra.mrb[6].mxu1 %vm390_vm3, %v477_v19  ;;  %v5367_v19 = vpack.c.bf16 %v4071_v15, %v4070_v14 }
 0x3db   :  { %4820 = vmatpush3.bf16.msra.mxu1 %v5248_v18  ;;  %4456 = vmatprep.mubr.msk.f32.mxu1 %vm4974_vm1, %v4975_v27 }
 0x3dc   :  { %4821 = vmatprep.subr.bf16.mxu1 %v4973_v3 }
 0x3df   :  { %4823 = vmatpush3.bf16.msra.mxu1 %v5258_v23 }
 0x3e0   :  { %4470 = vmatprep.subr.mxu1 %v4975_v27 }
 0x3e2   :  { %4457 = vmatmul.mubr.msk.f32.vlgmr.msra.gmra.mrb[8].mxu1 %vm139_vm2, %v5143_v39 }
 0x3e3   :  { %4472 = vmatprep.mubr.msk.f32.mxu1 %vm4974_vm1, %v4975_v27 }
 0x4ad   :  { %v547_v25 = vpop.f32.mrb[6].mxu1 }
 0x4ae   :  { %v4436_v28 = vpop.f32.mrb[7].mxu1 }
 0x4af   :  { %v5384_v28 = vpack.c.bf16 %v4073_v22, %v4072_v21  ;;  %v4085_v21 = vld [vmem:[%s5729_s3 + $0x78] sm:$0xff] }
 0x4b5   :  { %v715_v32 = vpop.f32.mrb[8].mxu1 }
 0x4b6   :  { %v716_v33 = vadd.f32 %v5277_v30, %v715_v32  ;;  %v4458_v35 = vpop.f32.mrb[9].mxu1 }
 0x4b8   :  { %4471 = vmatpush3.xpose.msk.msra.mxu1 %vm390_vm3, %v716_v33 }
 0x4b9   :  { %4475 = vmatprep.subr.mxu1 %v4975_v27 }
 0x4bb   :  { %4473 = vmatmul.mubr.msk.f32.vlgmr.msra.gmra.mrb[10].mxu1 %vm390_vm3, %v635_v40 }
 0x4bc   :  { %4476 = vmatpush3.msra.mxu1 %v799_v41  ;;  %4477 = vmatprep.mubr.msk.f32.mxu1 %vm4974_vm1, %v4975_v27 }
 0x4bd   :  { %4485 = vmatprep.subr.mxu1 %v4975_v27 }
 0x58e   :  { %v874_v42 = vpop.f32.mrb[10].mxu1 }
 0x58f   :  { %v4474_v45 = vpop.f32.mrb[11].mxu1  ;;  %v878_v46 = vsel %vm390_vm3, %v874_v42, -inf }
 0x590   :  { %879 = vmax.xlane.f32.xlu1 %v878_v46 }
 0x61d   :  { %v880_v48 = vpop.xlane.xlu1 %879 }
 0x61e   :  { %v881_v49 = vsub.f32 %v874_v42, %v880_v48  ;;  %v5403_v42 = vld [vmem:[%s5734_s4 + $0x2] ss:$0 sm:$0xff] }
 0x620   :  { %v882_v51 = vmul.f32 1.442695, %v881_v49 }
 0x622   :  { %4945 = vpow2.f32 %v882_v51  ;;  %v5410_v51 = vld [vmem:[%s5736_s8 + $0x2] ss:$0 sm:$0xff] }
 0x62c   :  { %v4946_v52 = vpop.eup %4945 }
 0x62d   :  { %v884_v53 = vsel %vm390_vm3, %v4946_v52, 0.0 }
 0x62e   :  { %885 = vadd.xlane.f32.xlu1 %v884_v53 }
 0x6bb   :  { %v886_v57 = vpop.xlane.xlu1 %885 }
 0x6bc   :  { %4947 = vrcp.f32 %v886_v57 }
 0x6c6   :  { %v4948_v58 = vpop.eup %4947 }
 0x6c7   :  { %v888_v59 = vmul.f32 %v4948_v58, %v4946_v52 }
 0x6c9   :  { %4478 = vmatmul.mubr.msk.f32.vlgmr.msra.gmra.mrb[12].mxu1 %vm390_vm3, %v888_v59 }
 0x6ca   :  { %4486 = vmatpush3.msra.mxu1 %v5305_v60  ;;  %4487 = vmatprep.mubr.msk.f32.mxu1 %vm4974_vm1, %v4975_v27 }
 0x6cb   :  { %4836 = vmatprep.subr.bf16.mxu1 %v4973_v3 }
 0x6cd   :  { %4488 = vmatmul.mubr.msk.f32.vlgmr.msra.gmra.mrb[14].mxu1 %vm390_vm3, %v547_v25  ;;  %v5382_v25 = vld [vmem:[%s5735_s6 + $0x2] ss:$0 sm:$0xff] }
 0x6ce   :  { %4838 = vmatpush3.bf16.msra.mxu1 %v5317_v0  ;;  %4509 = vmatprep.mubr.msk.f32.mxu1 %vm4974_vm1, %v4975_v27 }
 0x6cf   :  { %4839 = vmatprep.subr.bf16.mxu1 %v4973_v3 }
 0x6d2   :  { %4841 = vmatpush3.bf16.msra.mxu1 %v5328_v4 }
 0x6d3   :  { %4523 = vmatprep.subr.mxu1 %v4975_v27 }
 0x6d5   :  { %4510 = vmatmul.mubr.msk.f32.vlgmr.msra.gmra.mrb[16].mxu1 %vm139_vm2, %v5143_v39 }
 0x6d6   :  { %4525 = vmatprep.mubr.msk.f32.mxu1 %vm4974_vm1, %v4975_v27 }
 0x79c   :  { %v958_v10 = vpop.f32.mrb[12].mxu1 }
 0x79d   :  { %v4479_v11 = vpop.f32.mrb[13].mxu1  ;;  %4483 = vmatmul.mubr.msk.f32.vlgmr.msra.gmra.mrb[8].mxu0 %vm390_vm3, %v958_v10  ;;  %v4082_v10 = vld [vmem:[%s5729_s3 + $0x60] sm:$0xff] }
 0x79e   :  { %4832 = vmatpush3.bf16.msra.mxu0 %v5345_v7  ;;  %4498 = vmatprep.mubr.msk.f32.mxu0 %vm4974_vm1, %v4975_v27  ;;  %v4083_v11 = vld [vmem:[%s5729_s3 + $0x68] sm:$0xff] }
 0x79f   :  { %4833 = vmatprep.subr.bf16.mxu0 %v4973_v3  ;;  %v5431_v15 = vpack.c.bf16 %v4083_v11, %v4082_v10  ;;  %v5509_v10 = vld [vmem:[%s5734_s4 + $0x3] ss:$0 sm:$0xff] }
 0x7a0   :  { %v1106_v16 = vpop.f32.mrb[14].mxu1  ;;  %v5514_v11 = vld [vmem:[%s5735_s6 + $0x3] ss:$0 sm:$0xff] }
 0x7a1   :  { %v4489_v17 = vpop.f32.mrb[15].mxu1 }
 0x7a2   :  { %4835 = vmatpush3.bf16.msra.mxu0 %v5355_v13  ;;  %v4084_v17 = vld [vmem:[%s5729_s3 + $0x70] sm:$0xff] }
 0x7a3   :  { %4842 = vmatprep.subr.bf16.mxu0 %v4973_v3  ;;  %v5441_v22 = vpack.c.bf16 %v4085_v21, %v4084_v17 }
 0x7a5   :  { %4499 = vmatmul.mubr.msk.f32.vlgmr.msra.gmra.mrb[10].mxu0 %vm139_vm2, %v5143_v39 }
 0x7a6   :  { %4844 = vmatpush3.bf16.msra.mxu0 %v5367_v19  ;;  %4520 = vmatprep.mubr.msk.f32.mxu0 %vm4974_vm1, %v4975_v27 }
 0x7a7   :  { %4845 = vmatprep.subr.bf16.mxu0 %v4973_v3 }
 0x7a8   :  { %v1273_v31 = vpop.f32.mrb[16].mxu1 }
 0x7a9   :  { %v1274_v32 = vadd.f32 %v5382_v25, %v1273_v31  ;;  %v4511_v33 = vpop.f32.mrb[17].mxu1  ;;  %v4096_v31 = vld [vmem:[%s5730_s7 + $0x60] sm:$0xff] }
 0x7aa   :  { %4847 = vmatpush3.bf16.msra.mxu0 %v5384_v28 }
 0x7ab   :  { %4524 = vmatpush3.xpose.msk.msra.mxu1 %vm390_vm3, %v1274_v32  ;;  %4533 = vmatprep.subr.mxu0 %v4975_v27  ;;  %v4097_v32 = vld [vmem:[%s5730_s7 + $0x68] sm:$0xff] }
 0x7ac   :  { %4528 = vmatprep.subr.mxu1 %v4975_v27  ;;  %v5453_v33 = vpack.c.bf16 %v4097_v32, %v4096_v31 }
 0x7ad   :  { %4521 = vmatmul.mubr.msk.f32.vlgmr.msra.gmra.mrb[12].mxu0 %vm139_vm2, %v5143_v39 }
 0x7ae   :  { %4535 = vmatprep.mubr.msk.f32.mxu0 %vm4974_vm1, %v4975_v27  ;;  %4534 = vmatpush3.msra.mxu0 %v5421_v8 }
 0x7af   :  { %4854 = vmatprep.subr.bf16.mxu0 %v4973_v3 }
 0x870   :  { %v1033_v35 = vpop.f32.mrb[8].mxu0 }
 0x871   :  { %v5398_v40 = vadd.f32 %v1106_v16, %v1033_v35  ;;  %v4484_v41 = vpop.f32.mrb[9].mxu0  ;;  %v4098_v35 = vld [vmem:[%s5730_s7 + $0x70] sm:$0xff] }
 0x872   :  { %v4099_v41 = vld [vmem:[%s5730_s7 + $0x78] sm:$0xff] }
 0x878   :  { %v1189_v45 = vpop.f32.mrb[10].mxu0 }
 0x879   :  { %v1190_v46 = vadd.f32 %v5403_v42, %v1189_v45  ;;  %v4500_v48 = vpop.f32.mrb[11].mxu0  ;;  %v5465_v45 = vpack.c.bf16 %v4099_v41, %v4098_v35 }
 0x87a   :  { %v4090_v48 = vld [vmem:[%s5732_s5 + $0x68] sm:$0xff] }
 0x87b   :  { %v1193_v49 = vmul.f32 0.35355338, %v1190_v46  ;;  %v4089_v46 = vld [vmem:[%s5732_s5 + $0x60] sm:$0xff] }
 0x87d   :  { %4526 = vmatmul.mubr.msk.f32.vlgmr.msra.gmra.mrb[18].mxu1 %vm390_vm3, %v1193_v49  ;;  %v5482_v49 = vpack.c.bf16 %v4090_v48, %v4089_v46 }
 0x87e   :  { %4530 = vmatprep.mubr.msk.f32.mxu1 %vm4974_vm1, %v4975_v27 }
 0x880   :  { %v1356_v52 = vpop.f32.mrb[12].mxu0 }
 0x881   :  { %v1357_v53 = vadd.f32 %v5410_v51, %v1356_v52  ;;  %v4522_v57 = vpop.f32.mrb[13].mxu0  ;;  %v4091_v52 = vld [vmem:[%s5732_s5 + $0x70] sm:$0xff] }
 0x883   :  { %4529 = vmatpush3.msra.mxu1 %v1357_v53  ;;  %v4092_v53 = vld [vmem:[%s5732_s5 + $0x78] sm:$0xff] }
 0x884   :  { %4848 = vmatprep.subr.bf16.mxu1 %v4973_v3 }
 0x950   :  { %v1432_v58 = vpop.f32.mrb[18].mxu1 }
 0x951   :  { %v4527_v59 = vpop.f32.mrb[19].mxu1  ;;  %v1436_v61 = vsel %vm390_vm3, %v1432_v58, -inf }
 0x952   :  { %1437 = vmax.xlane.f32.xlu0 %v1436_v61  ;;  %v5492_v59 = vpack.c.bf16 %v4092_v53, %v4091_v52 }
 0x9df   :  { %v1438_v62 = vpop.xlane.xlu0 %1437 }
 0x9e0   :  { %v1439_v1 = vsub.f32 %v1432_v58, %v1438_v62 }
 0x9e2   :  { %v1440_v2 = vmul.f32 1.442695, %v1439_v1 }
 0x9e4   :  { %4949 = vpow2.f32 %v1440_v2 }
 0x9ee   :  { %v4950_v5 = vpop.eup %4949 }
 0x9ef   :  { %v1442_v6 = vsel %vm390_vm3, %v4950_v5, 0.0 }
 0x9f0   :  { %1443 = vadd.xlane.f32.xlu1 %v1442_v6 }
 0xa7d   :  { %v1444_v9 = vpop.xlane.xlu1 %1443 }
 0xa7e   :  { %4951 = vrcp.f32 %v1444_v9 }
 0xa88   :  { %v4952_v14 = vpop.eup %4951 }
 0xa89   :  { %v1446_v16 = vmul.f32 %v4952_v14, %v4950_v5 }
 0xa8b   :  { %4531 = vmatmul.mubr.msk.f32.vlgmr.msra.gmra.mrb[20].mxu1 %vm390_vm3, %v1446_v16 }
 0xa8c   :  { %4850 = vmatpush3.bf16.msra.mxu1 %v5431_v15  ;;  %4546 = vmatprep.mubr.msk.f32.mxu1 %vm4974_vm1, %v4975_v27 }
 0xa8d   :  { %4851 = vmatprep.subr.bf16.mxu1 %v4973_v3 }
 0xa90   :  { %4853 = vmatpush3.bf16.msra.mxu1 %v5441_v22 }
 0xa91   :  { %4860 = vmatprep.subr.bf16.mxu1 %v4973_v3 }
 0xa93   :  { %4547 = vmatmul.mubr.msk.f32.vlgmr.msra.gmra.mrb[22].mxu1 %vm139_vm2, %v5143_v39 }
 0xa94   :  { %4862 = vmatpush3.bf16.msra.mxu1 %v5453_v33  ;;  %4568 = vmatprep.mubr.msk.f32.mxu1 %vm4974_vm1, %v4975_v27 }
 0xa95   :  { %4863 = vmatprep.subr.bf16.mxu1 %v4973_v3 }
 0xa98   :  { %4865 = vmatpush3.bf16.msra.mxu1 %v5465_v45 }
 0xa99   :  { %4581 = vmatprep.subr.mxu1 %v4975_v27 }
 0xa9b   :  { %4569 = vmatmul.mubr.msk.f32.vlgmr.msra.gmra.mrb[24].mxu1 %vm139_vm2, %v5143_v39 }
 0xa9c   :  { %4583 = vmatprep.mubr.msk.f32.mxu1 %vm4974_vm1, %v4975_v27 }
 0xb5e   :  { %v1516_v57 = vpop.f32.mrb[20].mxu1 }
 0xb5f   :  { %v4532_v58 = vpop.f32.mrb[21].mxu1  ;;  %4536 = vmatmul.mubr.msk.f32.vlgmr.msra.gmra.mrb[14].mxu0 %vm390_vm3, %v1516_v57 }
 0xb60   :  { %4856 = vmatpush3.bf16.msra.mxu0 %v5482_v49  ;;  %4557 = vmatprep.mubr.msk.f32.mxu0 %vm4974_vm1, %v4975_v27  ;;  %v5535_v58 = vld [vmem:[%s5737_s9 + $0x18] sm:$0xff] }
 0xb61   :  { %4857 = vmatprep.subr.bf16.mxu0 %v4973_v3  ;;  %4582 = vmatpush3.msra.mxu1 %v5535_v58 }
 0xb62   :  { %4872 = vmatprep.subr.bf16.mxu1 %v4973_v3 }
 0xb64   :  { %4859 = vmatpush3.bf16.msra.mxu0 %v5492_v59 }
 0xb65   :  { %4571 = vmatprep.subr.mxu0 %v4975_v27 }
 0xb66   :  { %v1675_v61 = vpop.f32.mrb[22].mxu1 }
 0xb67   :  { %v4548_v62 = vpop.f32.mrb[23].mxu1  ;;  %4558 = vmatmul.mubr.msk.f32.vlgmr.msra.gmra.mrb[16].mxu0 %vm139_vm2, %v5143_v39  ;;  %v1676_v39 = vadd.f32 %v5509_v10, %v1675_v61 }
 0xb68   :  { %4573 = vmatprep.mubr.msk.f32.mxu0 %vm4974_vm1, %v4975_v27 }
 0xb69   :  { %v1679_v21 = vmul.f32 0.35355338, %v1676_v39 }
 0xb6e   :  { %v1842_v1 = vpop.f32.mrb[24].mxu1 }
 0xb6f   :  { %v4570_v2 = vpop.f32.mrb[25].mxu1 }
 0xc32   :  { %v1591_v5 = vpop.f32.mrb[14].mxu0 }
 0xc33   :  { %v5504_v6 = vadd.f32 %v1591_v5, %v5398_v40  ;;  %v4537_v9 = vpop.f32.mrb[15].mxu0  ;;  %v5521_v40 = vld [vmem:[%s5736_s8 + $0x3] ss:$0 sm:$0xff] }
 0xc34   :  { %v1843_v31 = vadd.f32 %v5521_v40, %v1842_v1 }
 0xc3a   :  { %v1759_v14 = vpop.f32.mrb[16].mxu0 }
 0xc3b   :  { %v1760_v16 = vadd.f32 %v5514_v11, %v1759_v14  ;;  %v4559_v17 = vpop.f32.mrb[17].mxu0 }
 0xc3d   :  { %4572 = vmatpush3.xpose.msk.msra.mxu0 %vm390_vm3, %v1760_v16 }
 0xc3e   :  { %4576 = vmatprep.subr.mxu0 %v4975_v27 }
 0xc40   :  { %4574 = vmatmul.mubr.msk.f32.vlgmr.msra.gmra.mrb[18].mxu0 %vm390_vm3, %v1679_v21 }
 0xc41   :  { %4577 = vmatpush3.msra.mxu0 %v1843_v31  ;;  %4578 = vmatprep.mubr.msk.f32.mxu0 %vm4974_vm1, %v4975_v27 }
 0xc42   :  { %4866 = vmatprep.subr.bf16.mxu0 %v4973_v3 }
 0xd13   :  { %v1918_v32 = vpop.f32.mrb[18].mxu0 }
 0xd14   :  { %v4575_v35 = vpop.f32.mrb[19].mxu0  ;;  %v1922_v41 = vsel %vm390_vm3, %v1918_v32, -inf }
 0xd15   :  { %1923 = vmax.xlane.f32.xlu0 %v1922_v41 }
 0xda2   :  { %v1924_v46 = vpop.xlane.xlu0 %1923 }
 0xda3   :  { %v1925_v48 = vsub.f32 %v1918_v32, %v1924_v46 }
 0xda5   :  { %v1926_v52 = vmul.f32 1.442695, %v1925_v48 }
 0xda7   :  { %4953 = vpow2.f32 %v1926_v52 }
 0xdb1   :  { %v4954_v53 = vpop.eup %4953 }
 0xdb2   :  { %v1928_v57 = vsel %vm390_vm3, %v4954_v53, 0.0 }
 0xdb3   :  { %1929 = vadd.xlane.f32.xlu1 %v1928_v57 }
 0xe40   :  { %v1930_v61 = vpop.xlane.xlu1 %1929 }
 0xe41   :  { %4955 = vrcp.f32 %v1930_v61 }
 0xe4b   :  { %v4956_v62 = vpop.eup %4955 }
 0xe4c   :  { %v1932_v1 = vmul.f32 %v4956_v62, %v4954_v53 }
 0xe4e   :  { %4579 = vmatmul.mubr.msk.f32.vlgmr.msra.gmra.mrb[20].mxu0 %vm390_vm3, %v1932_v1 }
 0xe4f   :  { %4868 = vmatpush3.bf16.msra.mxu0 %v5070_v12  ;;  %4594 = vmatprep.mubr.msk.f32.mxu0 %vm4974_vm1, %v4975_v27 }
 0xe50   :  { %4869 = vmatprep.subr.bf16.mxu0 %v4973_v3 }
 0xe53   :  { %4871 = vmatpush3.bf16.msra.mxu0 %v5104_v24 }
 0xe54   :  { %4878 = vmatprep.subr.bf16.mxu0 %v4973_v3 }
 0xe56   :  { %4595 = vmatmul.mubr.msk.f32.vlgmr.msra.gmra.mrb[22].mxu0 %vm139_vm2, %v5134_v34 }
 0xe57   :  { %4880 = vmatpush3.bf16.msra.mxu0 %v5089_v20  ;;  %4616 = vmatprep.mubr.msk.f32.mxu0 %vm4974_vm1, %v4975_v27 }
 0xe58   :  { %4881 = vmatprep.subr.bf16.mxu0 %v4973_v3 }
 0xe5b   :  { %4883 = vmatpush3.bf16.msra.mxu0 %v5109_v26 }
 0xe5c   :  { %4884 = vmatprep.subr.bf16.mxu0 %v4973_v3 }
 0xe5e   :  { %4617 = vmatmul.mubr.msk.f32.vlgmr.msra.gmra.mrb[24].mxu0 %vm139_vm2, %v5134_v34 }
 0xe5f   :  { %4886 = vmatpush3.bf16.msra.mxu0 %v5138_v37  ;;  %4637 = vmatprep.mubr.msk.f32.mxu0 %vm4974_vm1, %v4975_v27 }
 0xe60   :  { %4887 = vmatprep.subr.bf16.mxu0 %v4973_v3 }
 0xe63   :  { %4889 = vmatpush3.bf16.msra.mxu0 %v5172_v44 }
 0xe64   :  { %4896 = vmatprep.subr.bf16.mxu0 %v4973_v3 }
 0xe66   :  { %4638 = vmatmul.mubr.msk.f32.vlgmr.msra.gmra.mrb[26].mxu0 %vm139_vm2, %v5134_v34 }
 0xe67   :  { %4898 = vmatpush3.bf16.msra.mxu0 %v5188_v47  ;;  %4659 = vmatprep.mubr.msk.f32.mxu0 %vm4974_vm1, %v4975_v27 }
 0xe68   :  { %4899 = vmatprep.subr.bf16.mxu0 %v4973_v3 }
 0xe6b   :  { %4901 = vmatpush3.bf16.msra.mxu0 %v5203_v50 }
 0xe6c   :  { %4672 = vmatprep.subr.mxu0 %v4975_v27 }
 0xe6e   :  { %4660 = vmatmul.mubr.msk.f32.vlgmr.msra.gmra.mrb[28].mxu0 %vm139_vm2, %v5134_v34 }
 0xe6f   :  { %4673 = vmatpush3.msra.mxu0 %v5298_v54  ;;  %4674 = vmatprep.mubr.msk.f32.mxu0 %vm4974_vm1, %v4975_v27 }
 0xe70   :  { %4902 = vmatprep.subr.bf16.mxu0 %v4973_v3 }
 0xf21   :  { %v2002_v12 = vpop.f32.mrb[20].mxu0 }
 0xf22   :  { %v4580_v20 = vpop.f32.mrb[21].mxu0  ;;  %4584 = vmatmul.mubr.msk.f32.vlgmr.msra.gmra.mrb[26].mxu1 %vm390_vm3, %v2002_v12 }
 0xf23   :  { %4874 = vmatpush3.bf16.msra.mxu1 %v5136_v36  ;;  %4605 = vmatprep.mubr.msk.f32.mxu1 %vm4974_vm1, %v4975_v27 }
 0xf24   :  { %4875 = vmatprep.subr.bf16.mxu1 %v4973_v3 }
 0xf27   :  { %4877 = vmatpush3.bf16.msra.mxu1 %v5170_v43  ;;  %v5590_v43 = vld [vmem:[%s5738_s10] ss:$0 sm:$0xff] }
 0xf28   :  { %4619 = vmatprep.subr.mxu1 %v4975_v27 }
 0xf29   :  { %v2170_v24 = vpop.f32.mrb[22].mxu0 }
 0xf2a   :  { %v4596_v26 = vpop.f32.mrb[23].mxu0  ;;  %4606 = vmatmul.mubr.msk.f32.vlgmr.msra.gmra.mrb[28].mxu1 %vm139_vm2, %v5134_v34  ;;  %v2171_v14 = vadd.f32 %v5219_v55, %v2170_v24 }
 0xf2b   :  { %4621 = vmatprep.mubr.msk.f32.mxu1 %vm4974_vm1, %v4975_v27 }
 0xf2c   :  { %v2174_v31 = vmul.f32 0.35355338, %v2171_v14 }
 0xf31   :  { %v2333_v37 = vpop.f32.mrb[24].mxu0 }
 0xf32   :  { %v4618_v44 = vpop.f32.mrb[25].mxu0 }
 0xf39   :  { %v2575_v36 = vpop.f32.mrb[26].mxu0 }
 0xf3a   :  { %v4639_v47 = vpop.f32.mrb[27].mxu0  ;;  %v2576_v1 = vadd.f32 %v5272_v29, %v2575_v36 }
 0xf3c   :  { %v2579_v24 = vmul.f32 0.35355338, %v2576_v1 }
 0xf41   :  { %v2738_v50 = vpop.f32.mrb[28].mxu0 }
 0xf42   :  { %v4661_v54 = vpop.f32.mrb[29].mxu0 }
 0xff5   :  { %v2077_v2 = vpop.f32.mrb[26].mxu1 }
 0xff6   :  { %v2081_v5 = vadd.f32 %v2077_v2, %v5504_v6  ;;  %v4585_v9 = vpop.f32.mrb[27].mxu1  ;;  %v2334_v6 = vadd.f32 %v5231_v63, %v2333_v37 }
 0xff8   :  { %v2088_v39 = vadd.f32 %v5590_v43, %v2081_v5 }
 0xffa   :  { %2089 = vst.msk [vmem:[%s5739_s12] sm:$0xff] %vm139_vm2, %v2088_v39 }
 0xffd   :  { %v2252_v16 = vpop.f32.mrb[28].mxu1 }
 0xffe   :  { %v2253_v17 = vadd.f32 %v5224_v56, %v2252_v16  ;;  %v4607_v21 = vpop.f32.mrb[29].mxu1 }
0x1000   :  { %4620 = vmatpush3.xpose.msk.msra.mxu1 %vm390_vm3, %v2253_v17 }
0x1001   :  { %4624 = vmatprep.subr.mxu1 %v4975_v27 }
0x1003   :  { %4622 = vmatmul.mubr.msk.f32.vlgmr.msra.gmra.mrb[30].mxu1 %vm390_vm3, %v2174_v31 }
0x1004   :  { %4625 = vmatpush3.msra.mxu1 %v2334_v6  ;;  %4626 = vmatprep.mubr.msk.f32.mxu1 %vm4974_vm1, %v4975_v27 }
0x1005   :  { %4890 = vmatprep.subr.bf16.mxu1 %v4973_v3 }
0x10d6   :  { %v2409_v55 = vpop.f32.mrb[30].mxu1 }
0x10d7   :  { %v4623_v32 = vpop.f32.mrb[31].mxu1  ;;  %v2413_v56 = vsel %vm390_vm3, %v2409_v55, -inf }
0x10d8   :  { %2414 = vmax.xlane.f32.xlu0 %v2413_v56 }
0x1165   :  { %v2415_v35 = vpop.xlane.xlu0 %2414 }
0x1166   :  { %v2416_v41 = vsub.f32 %v2409_v55, %v2415_v35 }
0x1168   :  { %v2417_v46 = vmul.f32 1.442695, %v2416_v41 }
0x116a   :  { %4957 = vpow2.f32 %v2417_v46 }
0x1174   :  { %v4958_v48 = vpop.eup %4957 }
0x1175   :  { %v2419_v63 = vsel %vm390_vm3, %v4958_v48, 0.0 }
0x1176   :  { %2420 = vadd.xlane.f32.xlu1 %v2419_v63 }
0x1203   :  { %v2421_v52 = vpop.xlane.xlu1 %2420 }
0x1204   :  { %4959 = vrcp.f32 %v2421_v52 }
0x120e   :  { %v4960_v53 = vpop.eup %4959 }
0x120f   :  { %v2423_v57 = vmul.f32 %v4960_v53, %v4958_v48 }
0x1211   :  { %4627 = vmatmul.mubr.msk.f32.vlgmr.msra.gmra.mrb[32].mxu1 %vm390_vm3, %v2423_v57 }
0x1212   :  { %4892 = vmatpush3.bf16.msra.mxu1 %v5248_v18  ;;  %4648 = vmatprep.mubr.msk.f32.mxu1 %vm4974_vm1, %v4975_v27 }
0x1213   :  { %4893 = vmatprep.subr.bf16.mxu1 %v4973_v3 }
0x1216   :  { %4895 = vmatpush3.bf16.msra.mxu1 %v5258_v23  ;;  %v2739_v23 = vadd.f32 %v5284_v38, %v2738_v50 }
0x1217   :  { %4662 = vmatprep.subr.mxu1 %v4975_v27 }
0x1219   :  { %4649 = vmatmul.mubr.msk.f32.vlgmr.msra.gmra.mrb[34].mxu1 %vm139_vm2, %v5134_v34 }
0x121a   :  { %4664 = vmatprep.mubr.msk.f32.mxu1 %vm4974_vm1, %v4975_v27 }
0x12e4   :  { %v2493_v61 = vpop.f32.mrb[32].mxu1 }
0x12e5   :  { %v4628_v62 = vpop.f32.mrb[33].mxu1 }
0x12ec   :  { %v2657_v18 = vpop.f32.mrb[34].mxu1 }
0x12ed   :  { %v2658_v12 = vadd.f32 %v5277_v30, %v2657_v18  ;;  %v4650_v20 = vpop.f32.mrb[35].mxu1 }
0x12ef   :  { %4663 = vmatpush3.xpose.msk.msra.mxu1 %vm390_vm3, %v2658_v12 }
0x12f0   :  { %4667 = vmatprep.subr.mxu1 %v4975_v27 }
0x12f2   :  { %4665 = vmatmul.mubr.msk.f32.vlgmr.msra.gmra.mrb[36].mxu1 %vm390_vm3, %v2579_v24 }
0x12f3   :  { %4668 = vmatpush3.msra.mxu1 %v2739_v23  ;;  %4669 = vmatprep.mubr.msk.f32.mxu1 %vm4974_vm1, %v4975_v27 }
0x12f4   :  { %4677 = vmatprep.subr.mxu1 %v4975_v27 }
0x13c5   :  { %v2814_v29 = vpop.f32.mrb[36].mxu1 }
0x13c6   :  { %v4666_v26 = vpop.f32.mrb[37].mxu1  ;;  %v2818_v30 = vsel %vm390_vm3, %v2814_v29, -inf }
0x13c7   :  { %2819 = vmax.xlane.f32.xlu0 %v2818_v30 }
0x1454   :  { %v2820_v37 = vpop.xlane.xlu0 %2819 }
0x1455   :  { %v2821_v44 = vsub.f32 %v2814_v29, %v2820_v37 }
0x1457   :  { %v2822_v36 = vmul.f32 1.442695, %v2821_v44 }
0x1459   :  { %4961 = vpow2.f32 %v2822_v36 }
0x1463   :  { %v4962_v47 = vpop.eup %4961 }
0x1464   :  { %v2824_v38 = vsel %vm390_vm3, %v4962_v47, 0.0 }
0x1465   :  { %2825 = vadd.xlane.f32.xlu1 %v2824_v38 }
0x14f2   :  { %v2826_v50 = vpop.xlane.xlu1 %2825 }
0x14f3   :  { %4963 = vrcp.f32 %v2826_v50 }
0x14fd   :  { %v4964_v54 = vpop.eup %4963 }
0x14fe   :  { %v2828_v2 = vmul.f32 %v4964_v54, %v4962_v47 }
0x1500   :  { %4670 = vmatmul.mubr.msk.f32.vlgmr.msra.gmra.mrb[38].mxu1 %vm390_vm3, %v2828_v2 }
0x1501   :  { %4678 = vmatpush3.msra.mxu1 %v5305_v60  ;;  %4679 = vmatprep.mubr.msk.f32.mxu1 %vm4974_vm1, %v4975_v27 }
0x1502   :  { %4908 = vmatprep.subr.bf16.mxu1 %v4973_v3 }
0x1504   :  { %4680 = vmatmul.mubr.msk.f32.vlgmr.msra.gmra.mrb[40].mxu1 %vm390_vm3, %v2493_v61 }
0x1505   :  { %4910 = vmatpush3.bf16.msra.mxu1 %v5317_v0  ;;  %4701 = vmatprep.mubr.msk.f32.mxu1 %vm4974_vm1, %v4975_v27 }
0x1506   :  { %4911 = vmatprep.subr.bf16.mxu1 %v4973_v3 }
0x1509   :  { %4913 = vmatpush3.bf16.msra.mxu1 %v5328_v4 }
0x150a   :  { %4715 = vmatprep.subr.mxu1 %v4975_v27 }
0x150c   :  { %4702 = vmatmul.mubr.msk.f32.vlgmr.msra.gmra.mrb[42].mxu1 %vm139_vm2, %v5134_v34 }
0x150d   :  { %4717 = vmatprep.mubr.msk.f32.mxu1 %vm4974_vm1, %v4975_v27 }
0x15d3   :  { %v2898_v60 = vpop.f32.mrb[38].mxu1 }
0x15d4   :  { %v4671_v5 = vpop.f32.mrb[39].mxu1  ;;  %4675 = vmatmul.mubr.msk.f32.vlgmr.msra.gmra.mrb[30].mxu0 %vm390_vm3, %v2898_v60 }
0x15d5   :  { %4904 = vmatpush3.bf16.msra.mxu0 %v5345_v7  ;;  %4690 = vmatprep.mubr.msk.f32.mxu0 %vm4974_vm1, %v4975_v27 }
0x15d6   :  { %4905 = vmatprep.subr.bf16.mxu0 %v4973_v3 }
0x15d7   :  { %v3045_v0 = vpop.f32.mrb[40].mxu1 }
0x15d8   :  { %v4681_v4 = vpop.f32.mrb[41].mxu1 }
0x15d9   :  { %4907 = vmatpush3.bf16.msra.mxu0 %v5355_v13 }
0x15da   :  { %4914 = vmatprep.subr.bf16.mxu0 %v4973_v3 }
0x15dc   :  { %4691 = vmatmul.mubr.msk.f32.vlgmr.msra.gmra.mrb[32].mxu0 %vm139_vm2, %v5134_v34 }
0x15dd   :  { %4916 = vmatpush3.bf16.msra.mxu0 %v5367_v19  ;;  %4712 = vmatprep.mubr.msk.f32.mxu0 %vm4974_vm1, %v4975_v27 }
0x15de   :  { %4917 = vmatprep.subr.bf16.mxu0 %v4973_v3 }
0x15df   :  { %v3208_v7 = vpop.f32.mrb[42].mxu1 }
0x15e0   :  { %v3209_v9 = vadd.f32 %v5382_v25, %v3208_v7  ;;  %v4703_v39 = vpop.f32.mrb[43].mxu1 }
0x15e1   :  { %4919 = vmatpush3.bf16.msra.mxu0 %v5384_v28 }
0x15e2   :  { %4716 = vmatpush3.xpose.msk.msra.mxu1 %vm390_vm3, %v3209_v9  ;;  %4725 = vmatprep.subr.mxu0 %v4975_v27 }
0x15e3   :  { %4720 = vmatprep.subr.mxu1 %v4975_v27 }
0x15e4   :  { %4713 = vmatmul.mubr.msk.f32.vlgmr.msra.gmra.mrb[34].mxu0 %vm139_vm2, %v5134_v34 }
0x15e5   :  { %4726 = vmatpush3.msra.mxu0 %v5421_v8  ;;  %4727 = vmatprep.mubr.msk.f32.mxu0 %vm4974_vm1, %v4975_v27 }
0x15e6   :  { %4926 = vmatprep.subr.bf16.mxu0 %v4973_v3 }
0x16a7   :  { %v2972_v13 = vpop.f32.mrb[30].mxu0 }
0x16a8   :  { %v3046_v19 = vadd.f32 %v3045_v0, %v2972_v13  ;;  %v4676_v25 = vpop.f32.mrb[31].mxu0 }
0x16af   :  { %v3126_v28 = vpop.f32.mrb[32].mxu0 }
0x16b0   :  { %v3127_v14 = vadd.f32 %v5403_v42, %v3126_v28  ;;  %v4692_v16 = vpop.f32.mrb[33].mxu0 }
0x16b2   :  { %v3130_v17 = vmul.f32 0.35355338, %v3127_v14 }
0x16b4   :  { %4718 = vmatmul.mubr.msk.f32.vlgmr.msra.gmra.mrb[44].mxu1 %vm390_vm3, %v3130_v17 }
0x16b5   :  { %4722 = vmatprep.mubr.msk.f32.mxu1 %vm4974_vm1, %v4975_v27 }
0x16b7   :  { %v3289_v21 = vpop.f32.mrb[34].mxu0 }
0x16b8   :  { %v3290_v8 = vadd.f32 %v5410_v51, %v3289_v21  ;;  %v4714_v31 = vpop.f32.mrb[35].mxu0 }
0x16ba   :  { %4721 = vmatpush3.msra.mxu1 %v3290_v8 }
0x16bb   :  { %4920 = vmatprep.subr.bf16.mxu1 %v4973_v3 }
0x1787   :  { %v3365_v6 = vpop.f32.mrb[44].mxu1 }
0x1788   :  { %v4719_v55 = vpop.f32.mrb[45].mxu1  ;;  %v3369_v32 = vsel %vm390_vm3, %v3365_v6, -inf }
0x1789   :  { %3370 = vmax.xlane.f32.xlu0 %v3369_v32 }
0x1816   :  { %v3371_v42 = vpop.xlane.xlu0 %3370 }
0x1817   :  { %v3372_v56 = vsub.f32 %v3365_v6, %v3371_v42 }
0x1819   :  { %v3373_v35 = vmul.f32 1.442695, %v3372_v56 }
0x181b   :  { %4965 = vpow2.f32 %v3373_v35 }
0x1825   :  { %v4966_v41 = vpop.eup %4965 }
0x1826   :  { %v3375_v46 = vsel %vm390_vm3, %v4966_v41, 0.0 }
0x1827   :  { %3376 = vadd.xlane.f32.xlu1 %v3375_v46 }
0x18b4   :  { %v3377_v48 = vpop.xlane.xlu1 %3376 }
0x18b5   :  { %4967 = vrcp.f32 %v3377_v48 }
0x18bf   :  { %v4968_v51 = vpop.eup %4967 }
0x18c0   :  { %v3379_v63 = vmul.f32 %v4968_v51, %v4966_v41 }
0x18c2   :  { %4723 = vmatmul.mubr.msk.f32.vlgmr.msra.gmra.mrb[46].mxu1 %vm390_vm3, %v3379_v63 }
0x18c3   :  { %4922 = vmatpush3.bf16.msra.mxu1 %v5431_v15  ;;  %4738 = vmatprep.mubr.msk.f32.mxu1 %vm4974_vm1, %v4975_v27 }
0x18c4   :  { %4923 = vmatprep.subr.bf16.mxu1 %v4973_v3 }
0x18c7   :  { %4925 = vmatpush3.bf16.msra.mxu1 %v5441_v22 }
0x18c8   :  { %4932 = vmatprep.subr.bf16.mxu1 %v4973_v3 }
0x18ca   :  { %4739 = vmatmul.mubr.msk.f32.vlgmr.msra.gmra.mrb[48].mxu1 %vm139_vm2, %v5134_v34 }
0x18cb   :  { %4934 = vmatpush3.bf16.msra.mxu1 %v5453_v33  ;;  %4760 = vmatprep.mubr.msk.f32.mxu1 %vm4974_vm1, %v4975_v27 }
0x18cc   :  { %4935 = vmatprep.subr.bf16.mxu1 %v4973_v3 }
0x18cf   :  { %4937 = vmatpush3.bf16.msra.mxu1 %v5465_v45 }
0x18d0   :  { %4773 = vmatprep.subr.mxu1 %v4975_v27 }
0x18d2   :  { %4761 = vmatmul.mubr.msk.f32.vlgmr.msra.gmra.mrb[50].mxu1 %vm139_vm2, %v5134_v34 }
0x18d3   :  { %4774 = vmatpush3.msra.mxu1 %v5535_v58  ;;  %4775 = vmatprep.mubr.msk.f32.mxu1 %vm4974_vm1, %v4975_v27 }
0x1995   :  { %v3449_v15 = vpop.f32.mrb[46].mxu1 }
0x1996   :  { %v4724_v22 = vpop.f32.mrb[47].mxu1  ;;  %4728 = vmatmul.mubr.msk.f32.vlgmr.msra.gmra.mrb[36].mxu0 %vm390_vm3, %v3449_v15 }
0x1997   :  { %4928 = vmatpush3.bf16.msra.mxu0 %v5482_v49  ;;  %4749 = vmatprep.mubr.msk.f32.mxu0 %vm4974_vm1, %v4975_v27 }
0x1998   :  { %4929 = vmatprep.subr.bf16.mxu0 %v4973_v3 }
0x199b   :  { %4931 = vmatpush3.bf16.msra.mxu0 %v5492_v59 }
0x199c   :  { %4763 = vmatprep.subr.mxu0 %v4975_v27 }
0x199d   :  { %v3605_v33 = vpop.f32.mrb[48].mxu1 }
0x199e   :  { %v4740_v45 = vpop.f32.mrb[49].mxu1  ;;  %4750 = vmatmul.mubr.msk.f32.vlgmr.msra.gmra.mrb[38].mxu0 %vm139_vm2, %v5134_v34  ;;  %v3606_v61 = vadd.f32 %v5509_v10, %v3605_v33 }
0x199f   :  { %4765 = vmatprep.mubr.msk.f32.mxu0 %vm4974_vm1, %v4975_v27 }
0x19a0   :  { %v3609_v1 = vmul.f32 0.35355338, %v3606_v61 }
0x19a5   :  { %v3768_v58 = vpop.f32.mrb[50].mxu1 }
0x19a6   :  { %v4762_v52 = vpop.f32.mrb[51].mxu1  ;;  %v3769_v34 = vadd.f32 %v5521_v40, %v3768_v58 }
0x1a69   :  { %v3523_v49 = vpop.f32.mrb[36].mxu0 }
0x1a6a   :  { %v3527_v53 = vadd.f32 %v3523_v49, %v3046_v19  ;;  %v4729_v57 = vpop.f32.mrb[37].mxu0 }
0x1a71   :  { %v3687_v3 = vpop.f32.mrb[38].mxu0 }
0x1a72   :  { %v3688_v59 = vadd.f32 %v5514_v11, %v3687_v3  ;;  %v4751_v62 = vpop.f32.mrb[39].mxu0 }
0x1a74   :  { %4764 = vmatpush3.xpose.msk.msra.mxu0 %vm390_vm3, %v3688_v59 }
0x1a75   :  { %4768 = vmatprep.subr.mxu0 %v4975_v27 }
0x1a77   :  { %4766 = vmatmul.mubr.msk.f32.vlgmr.msra.gmra.mrb[40].mxu0 %vm390_vm3, %v3609_v1 }
0x1a78   :  { %4769 = vmatpush3.msra.mxu0 %v3769_v34  ;;  %4770 = vmatprep.mubr.msk.f32.mxu0 %vm4974_vm1, %v4975_v27 }
0x1b4a   :  { %v3844_v18 = vpop.f32.mrb[40].mxu0 }
0x1b4b   :  { %v4767_v12 = vpop.f32.mrb[41].mxu0  ;;  %v3848_v10 = vsel %vm390_vm3, %v3844_v18, -inf }
0x1b4c   :  { %3849 = vmax.xlane.f32.xlu0 %v3848_v10 }
0x1bd9   :  { %v3850_v11 = vpop.xlane.xlu0 %3849 }
0x1bda   :  { %v3851_v20 = vsub.f32 %v3844_v18, %v3850_v11 }
0x1bdc   :  { %v3852_v24 = vmul.f32 1.442695, %v3851_v20 }
0x1bde   :  { %4969 = vpow2.f32 %v3852_v24 }
0x1be8   :  { %v4970_v23 = vpop.eup %4969 }
0x1be9   :  { %v3854_v29 = vsel %vm390_vm3, %v4970_v23, 0.0 }
0x1bea   :  { %3855 = vadd.xlane.f32.xlu1 %v3854_v29 }
0x1c77   :  { %v3856_v40 = vpop.xlane.xlu1 %3855 }
0x1c78   :  { %4971 = vrcp.f32 %v3856_v40 }
0x1c82   :  { %v4972_v26 = vpop.eup %4971 }
0x1c83   :  { %v3858_v30 = vmul.f32 %v4972_v26, %v4970_v23 }
0x1c85   :  { %4771 = vmatmul.mubr.msk.f32.vlgmr.msra.gmra.mrb[42].mxu0 %vm390_vm3, %v3858_v30 }
0x1d58   :  { %v3928_v27 = vpop.f32.mrb[42].mxu0 }
0x1d59   :  { %v4772_v37 = vpop.f32.mrb[43].mxu0  ;;  %4776 = vmatmul.mubr.msk.f32.vlgmr.msra.gmra.mrb[52].mxu1 %vm390_vm3, %v3928_v27 }
0x1e2c   :  { %v4002_v44 = vpop.f32.mrb[52].mxu1 }
0x1e2d   :  { %v4006_v36 = vadd.f32 %v4002_v44, %v3527_v53  ;;  %v4777_v47 = vpop.f32.mrb[53].mxu1 }
0x1e2f   :  { %v4007_v38 = vadd.f32 %v5590_v43, %v4006_v36 }
0x1e31   :  { %4008 = vst.msk [vmem:[%s5739_s12 + $0x8] sm:$0xff] %vm139_vm2, %v4007_v38 }

</bundles_post_ra>
